<compile_context>
chip_gen: v5e
topology: v5e:2x2
jax: 0.10.0
libtpu: 0.0.40
codegen_flags: <defaults>
</compile_context>

<pallas_src>
import jax
import jax.numpy as jnp
from jax.experimental import pallas as pl
from jax.experimental.pallas import tpu as pltpu

_MASK_EPS = 1e-5  # tolerance for the grid_sample(ones) >= 1.0 validity mask


def _resize_bilinear_align_corners(x, out_h, out_w):
    """PyTorch F.interpolate(mode='bilinear', align_corners=True) for NCHW."""
    B, C, H, W = x.shape
    if (H, W) == (out_h, out_w):
        return x

    def src_coords(out_n, in_n):
        if out_n == 1:
            return jnp.zeros((1,), jnp.float32)
        return jnp.arange(out_n, dtype=jnp.float32) * ((in_n - 1) / (out_n - 1))

    ys = src_coords(out_h, H)
    xs = src_coords(out_w, W)
    y0 = jnp.floor(ys).astype(jnp.int32)
    y1 = jnp.minimum(y0 + 1, H - 1)
    x0 = jnp.floor(xs).astype(jnp.int32)
    x1 = jnp.minimum(x0 + 1, W - 1)
    wy = (ys - y0.astype(jnp.float32))[None, None, :, None]
    wx = (xs - x0.astype(jnp.float32))[None, None, None, :]
    top = x[:, :, y0, :] * (1.0 - wy) + x[:, :, y1, :] * wy
    out = top[:, :, :, x0] * (1.0 - wx) + top[:, :, :, x1] * wx
    return out


def _make_warp_kernel(H, W, TP):
    """Kernel factory; H, W, TP (output-pixel column tile) are static."""
    HW = H * W
    w_f = float(W)
    h_f = float(H)

    def kernel(intrin_ref, x_ref, dsf_ref, xw_ref, aux_ref):
        b = pl.program_id(0)
        p = pl.program_id(1)
        fx = intrin_ref[b, 0]
        fy = intrin_ref[b, 1]
        cx = intrin_ref[b, 2]
        cy = intrin_ref[b, 3]

        # ---- output-pixel (u, v) generated in-kernel (no uv input stream) ----
        lane = jax.lax.broadcasted_iota(jnp.int32, (1, TP), 1).astype(jnp.float32)
        flat = (p * TP).astype(jnp.float32) + lane          # flat pixel index
        v = jnp.floor(flat / w_f)                           # row (exact: ints < 2^24)
        u = flat - v * w_f                                  # col

        dsf = dsf_ref[0]                                    # (4, TP): disp | sf xyz

        # ---- disp -> depth (disp2depth_kitti); disp scaled by w_x ----
        disp = dsf[0:1, :] * w_f
        depth = fx * 0.54 / (disp + (disp == 0.0).astype(jnp.float32) * 1e-8)
        depth = jnp.clip(depth, 1e-3, 80.0)

        # ---- pixel2pts: pts1 = K^-1 @ [u, v, 1]^T * depth ----
        X = (u - cx) / fx * depth
        Y = (v - cy) / fy * depth
        Z = depth

        # ---- + scene flow, re-project (normalize/unnormalize elided) ----
        Xt = X + dsf[1:2, :]
        Yt = Y + dsf[2:3, :]
        Zt = Z + dsf[3:4, :]

        # merged aux output: [pts1 (3) | pts1_tf (3)]; depth == pts1 row 2
        aux_ref[0] = jnp.concatenate([X, Y, Z, Xt, Yt, Zt], axis=0)

        pz = Zt + 1e-8
        ix = (fx * Xt + cx * Zt) / pz                       # (1, TP)
        iy = (fy * Yt + cy * Zt) / pz

        # ---- bilinear corner weights; zero-padding via validity masking ----
        ix0 = jnp.floor(ix)
        iy0 = jnp.floor(iy)
        ix1 = ix0 + 1.0
        iy1 = iy0 + 1.0
        tx = ix - ix0
        ty = iy - iy0
        wx0 = 1.0 - tx
        wy0 = 1.0 - ty

        vx0 = (ix0 >= 0.0) & (ix0 <= w_f - 1.0)
        vx1 = (ix1 >= 0.0) & (ix1 <= w_f - 1.0)
        vy0 = (iy0 >= 0.0) & (iy0 <= h_f - 1.0)
        vy1 = (iy1 >= 0.0) & (iy1 <= h_f - 1.0)

        w00 = jnp.where(vy0 & vx0, wy0 * wx0, 0.0)
        w01 = jnp.where(vy0 & vx1, wy0 * tx, 0.0)
        w10 = jnp.where(vy1 & vx0, ty * wx0, 0.0)
        w11 = jnp.where(vy1 & vx1, ty * tx, 0.0)

        # grid_sample of ones == sum of validity-masked corner weights.
        # Use a tiny tolerance: the exact-1.0 compare is rounding-unstable.
        mask = ((w00 + w01 + w10 + w11) >= 1.0 - _MASK_EPS).astype(jnp.float32)
        # fold mask into the weights -> no (C, TP) epilogue multiply
        w00 = w00 * mask
        w01 = w01 * mask
        w10 = w10 * mask
        w11 = w11 * mask

        # clipped flat source indices (clipped corners always carry 0 weight)
        x0c = jnp.clip(ix0, 0.0, w_f - 1.0)
        x1c = jnp.clip(ix1, 0.0, w_f - 1.0)
        y0c = jnp.clip(iy0, 0.0, h_f - 1.0)
        y1c = jnp.clip(iy1, 0.0, h_f - 1.0)
        idx00 = (y0c * w_f + x0c).astype(jnp.int32)          # (1, TP)
        idx01 = (y0c * w_f + x1c).astype(jnp.int32)
        idx10 = (y1c * w_f + x0c).astype(jnp.int32)
        idx11 = (y1c * w_f + x1c).astype(jnp.int32)

        # (HW, TP) slab of the one-hot sampling matrix, built from a column
        # iota (no (HW, TP) int32 iota materialized per step).
        q = jax.lax.broadcasted_iota(jnp.int32, (HW, 1), 0)
        s = jnp.where(q == idx00, w00, 0.0)
        s = s + jnp.where(q == idx01, w01, 0.0)
        s = s + jnp.where(q == idx10, w10, 0.0)
        s = s + jnp.where(q == idx11, w11, 0.0)

        # MXU contraction in x's native dtype (bf16 stays bf16).
        warped = jnp.dot(x_ref[0], s.astype(x_ref.dtype),
                         preferred_element_type=jnp.float32)
        xw_ref[0] = warped.astype(xw_ref.dtype)

    return kernel


def warping_layer_sf(x, sceneflow, disp, k1, input_size, *, tp=None):
    """Returns (x_warp * mask, pts1, pts1_tf, output_depth) — same as PyTorch."""
    B, C, H, W = x.shape
    HW = H * W

    # interpolate2d_as glue (align_corners=True bilinear)
    disp_s = _resize_bilinear_align_corners(disp.astype(jnp.float32), H, W)
    sf_s = _resize_bilinear_align_corners(sceneflow.astype(jnp.float32), H, W)

    # local_scale / input_size -> intrinsic_scale (closed form, no inverse)
    sy = H / input_size[:, 0]
    sx = W / input_size[:, 1]
    fx = k1[:, 0, 0] * sx
    fy = k1[:, 1, 1] * sy
    cx = k1[:, 0, 2] * sx
    cy = k1[:, 1, 2] * sy
    intrin = jnp.stack([fx, fy, cx, cy], axis=1).astype(jnp.float32)   # (B, 4)

    # merged disp+sceneflow stream, lane-padded to a multiple of 128
    dsf = jnp.concatenate([disp_s, sf_s], axis=1).reshape(B, 4, HW)
    HW_pad = ((HW + 127) // 128) * 128
    if HW_pad != HW:
        dsf = jnp.pad(dsf, ((0, 0), (0, 0), (0, HW_pad - HW)))

    x_flat = x.reshape(B, C, HW)            # resident (C, HW) image, native dtype

    if tp is None:
        # 256 matches the v6e/v7x MXU N dimension; still fine (2 passes) on v5e.
        tp = 256 if HW_pad % 256 == 0 else 128
    npb = HW_pad // tp

    # rough VMEM footprint; only raise the scoped limit when we'd exceed the
    # smallest default (16 MiB on v5e).
    itemsize = jnp.dtype(x.dtype).itemsize
    vmem_est = (2 * C * HW * itemsize            # double-buffered resident x block
                + 3 * HW * tp * 4                # slab + compare temporaries
                + 2 * 4 * tp * 4                 # dsf input
                + 2 * (C * itemsize + 6 * 4) * tp)   # output blocks
    vmem_limit = None
    if vmem_est > 12 * 1024 * 1024:
        vmem_limit = int(min(2 * vmem_est, 64 * 1024 * 1024))

    out_shape = (
        jax.ShapeDtypeStruct((B, C, HW_pad), x.dtype),      # x_warp * mask
        jax.ShapeDtypeStruct((B, 6, HW_pad), jnp.float32),  # pts1 | pts1_tf
    )

    xw, aux = pl.pallas_call(
        _make_warp_kernel(H, W, tp),
        out_shape=out_shape,
        grid=(B, npb),
        in_specs=[
            pl.BlockSpec(memory_space=pltpu.MemorySpace.SMEM),   # intrin (B, 4)
            pl.BlockSpec((1, C, HW), lambda b, p: (b, 0, 0)),    # x (all pixels)
            pl.BlockSpec((1, 4, tp), lambda b, p: (b, 0, p)),    # disp | sceneflow
        ],
        out_specs=(
            pl.BlockSpec((1, C, tp), lambda b, p: (b, 0, p)),
            pl.BlockSpec((1, 6, tp), lambda b, p: (b, 0, p)),
        ),
        compiler_params=pltpu.CompilerParams(
            dimension_semantics=("parallel", "parallel"),
            vmem_limit_bytes=vmem_limit),
    )(intrin, x_flat, dsf)

    xw = xw[:, :, :HW].reshape(B, C, H, W)
    aux = aux[:, :, :HW]
    pts1 = aux[:, 0:3].reshape(B, 3, H, W)
    pts1_tf = aux[:, 3:6].reshape(B, 3, H, W)
    depth = aux[:, 2:3].reshape(B, 1, H, W)
    return xw, pts1, pts1_tf, depth


def _reference(x, sceneflow, disp, k1, input_size):
    """Plain-JAX reference of the same forward math (gather-based sampling)."""
    B, C, H, W = x.shape
    disp_s = _resize_bilinear_align_corners(disp.astype(jnp.float32), H, W) * W
    sf_s = _resize_bilinear_align_corners(sceneflow.astype(jnp.float32), H, W)

    sy = H / input_size[:, 0]
    sx = W / input_size[:, 1]
    fx = (k1[:, 0, 0] * sx)[:, None, None, None]
    fy = (k1[:, 1, 1] * sy)[:, None, None, None]
    cx = (k1[:, 0, 2] * sx)[:, None, None, None]
    cy = (k1[:, 1, 2] * sy)[:, None, None, None]

    depth = fx * 0.54 / (disp_s + (disp_s == 0.0).astype(jnp.float32) * 1e-8)
    depth = jnp.clip(depth, 1e-3, 80.0)

    u = jnp.arange(W, dtype=jnp.float32)[None, None, None, :]
    v = jnp.arange(H, dtype=jnp.float32)[None, None, :, None]
    X = (u - cx) / fx * depth
    Y = (v - cy) / fy * depth
    pts1 = jnp.concatenate([X, Y, depth], axis=1)
    pts1_tf = pts1 + sf_s
    Xt, Yt, Zt = pts1_tf[:, 0:1], pts1_tf[:, 1:2], pts1_tf[:, 2:3]
    pz = Zt + 1e-8
    ix = (fx * Xt + cx * Zt) / pz
    iy = (fy * Yt + cy * Zt) / pz

    ix0 = jnp.floor(ix)
    iy0 = jnp.floor(iy)
    tx = ix - ix0
    ty = iy - iy0
    x_f = x.astype(jnp.float32).reshape(B, C, H * W)

    def corner(iyc, ixc, w):
        valid = (ixc >= 0) & (ixc <= W - 1) & (iyc >= 0) & (iyc <= H - 1)
        w = jnp.where(valid, w, 0.0)
        xi = jnp.clip(ixc, 0, W - 1).astype(jnp.int32)
        yi = jnp.clip(iyc, 0, H - 1).astype(jnp.int32)
        flat = (yi * W + xi).reshape(B, 1, H * W)
        g = jnp.take_along_axis(x_f, jnp.broadcast_to(flat, (B, C, H * W)),
                                axis=2)
        return g.reshape(B, C, H, W) * w, w

    g00, w00 = corner(iy0, ix0, (1 - ty) * (1 - tx))
    g01, w01 = corner(iy0, ix0 + 1, (1 - ty) * tx)
    g10, w10 = corner(iy0 + 1, ix0, ty * (1 - tx))
    g11, w11 = corner(iy0 + 1, ix0 + 1, ty * tx)
    x_warp = g00 + g01 + g10 + g11
    mask = ((w00 + w01 + w10 + w11) >= 1.0 - _MASK_EPS).astype(jnp.float32)
    return (x_warp * mask).astype(x.dtype), pts1, pts1_tf, depth


if __name__ == "__main__":
    key = jax.random.PRNGKey(0)
    B, C, H, W = 2, 4, 16, 16
    k0, k1_, k2, _ = jax.random.split(key, 4)

    x = jax.random.normal(k0, (B, C, H, W), jnp.float32)
    # scene flow and disparity at half resolution (exercises interpolate2d_as)
    sceneflow = 0.5 * jax.random.normal(k1_, (B, 3, H // 2, W // 2), jnp.float32)
    disp = jax.random.uniform(k2, (B, 1, H // 2, W // 2), jnp.float32,
                              minval=0.05, maxval=0.3)
    input_size = jnp.tile(jnp.array([[64.0, 128.0]], jnp.float32), (B, 1))
    k1 = jnp.tile(jnp.array([[[100.0, 0.0, 64.0],
                              [0.0, 100.0, 32.0],
                              [0.0, 0.0, 1.0]]], jnp.float32), (B, 1, 1))

    outs = jax.block_until_ready(
        warping_layer_sf(x, sceneflow, disp, k1, input_size))
    x_warp_masked, pts1, pts1_tf, depth = outs

    assert x_warp_masked.shape == (B, C, H, W)
    assert pts1.shape == (B, 3, H, W)
    assert pts1_tf.shape == (B, 3, H, W)
    assert depth.shape == (B, 1, H, W)

    # light numerical self-check against a plain-JAX reference of the same math
    ref = _reference(x, sceneflow, disp, k1, input_size)
    assert float(jnp.max(jnp.abs(pts1 - ref[1]))) < 1e-3
    assert float(jnp.max(jnp.abs(pts1_tf - ref[2]))) < 1e-3
    assert float(jnp.max(jnp.abs(depth - ref[3]))) < 1e-3
    # warped output: fraction-of-mismatch check (robust to rare 1-ulp
    # floor/mask-boundary flips between XLA and Mosaic float fusion)
    bad = jnp.mean((jnp.abs(x_warp_masked - ref[0]) > 1e-3).astype(jnp.float32))
    assert float(bad) < 0.02

    print("KERNEL_OK")
</pallas_src>

<mosaic_0001>
module attributes {stable_mosaic.version = 11 : i64} {
  func.func @kernel(%arg0: i32, %arg1: i32, %arg2: memref<2x4xf32, #tpu.memory_space<smem>>, %arg3: memref<1x4x256xf32, #tpu.memory_space<vmem>>, %arg4: memref<1x4x256xf32, #tpu.memory_space<vmem>>, %arg5: memref<1x4x256xf32, #tpu.memory_space<vmem>>, %arg6: memref<1x6x256xf32, #tpu.memory_space<vmem>>) attributes {dimension_semantics = [#tpu.dimension_semantics<parallel>, #tpu.dimension_semantics<parallel>], iteration_bounds = array<i64: 2, 1>, scalar_prefetch = 0 : i64, scratch_operands = 0 : i64, tpu.core_type = #tpu.core_type<tc>, window_params = [{transform_indices = @transform_0, window_bounds = array<i64: 2, 4>}, {transform_indices = @transform_1, window_bounds = array<i64: 1, 4, 256>}, {transform_indices = @transform_2, window_bounds = array<i64: 1, 4, 256>}, {transform_indices = @transform_3, window_bounds = array<i64: 1, 4, 256>}, {transform_indices = @transform_4, window_bounds = array<i64: 1, 6, 256>}]} {
    %0 = arith.index_cast %arg0 : i32 to index
    %c0 = arith.constant 0 : index
    %1 = memref.load %arg2[%0, %c0] : memref<2x4xf32, #tpu.memory_space<smem>>
    %2 = arith.index_cast %arg0 : i32 to index
    %c1 = arith.constant 1 : index
    %3 = memref.load %arg2[%2, %c1] : memref<2x4xf32, #tpu.memory_space<smem>>
    %4 = arith.index_cast %arg0 : i32 to index
    %c2 = arith.constant 2 : index
    %5 = memref.load %arg2[%4, %c2] : memref<2x4xf32, #tpu.memory_space<smem>>
    %6 = arith.index_cast %arg0 : i32 to index
    %c3 = arith.constant 3 : index
    %7 = memref.load %arg2[%6, %c3] : memref<2x4xf32, #tpu.memory_space<smem>>
    %8 = tpu.iota {dimensions = array<i32: 1>} : vector<1x256xi32>
    %9 = arith.sitofp %8 : vector<1x256xi32> to vector<1x256xf32>
    %c256_i32 = arith.constant 256 : i32
    %10 = arith.muli %arg1, %c256_i32 : i32
    %11 = arith.sitofp %10 : i32 to f32
    %12 = vector.broadcast %11 : f32 to vector<1x256xf32>
    %13 = arith.addf %12, %9 : vector<1x256xf32>
    %cst = arith.constant 1.600000e+01 : f32
    %14 = vector.broadcast %cst : f32 to vector<1x256xf32>
    %15 = arith.divf %13, %14 : vector<1x256xf32>
    %16 = math.floor %15 : vector<1x256xf32>
    %cst_0 = arith.constant 1.600000e+01 : f32
    %17 = vector.broadcast %cst_0 : f32 to vector<1x256xf32>
    %18 = arith.mulf %16, %17 : vector<1x256xf32>
    %19 = arith.subf %13, %18 : vector<1x256xf32>
    %c0_1 = arith.constant 0 : index
    %c0_2 = arith.constant 0 : index
    %c0_3 = arith.constant 0 : index
    %20 = vector.load %arg4[%c0_1, %c0_2, %c0_3] : memref<1x4x256xf32, #tpu.memory_space<vmem>>, vector<1x4x256xf32>
    %21 = vector.shape_cast %20 : vector<1x4x256xf32> to vector<4x256xf32>
    %22 = vector.extract_strided_slice %21 {offsets = [0, 0], sizes = [1, 256], strides = [1, 1]} : vector<4x256xf32> to vector<1x256xf32>
    %cst_4 = arith.constant 1.600000e+01 : f32
    %23 = vector.broadcast %cst_4 : f32 to vector<1x256xf32>
    %24 = arith.mulf %22, %23 : vector<1x256xf32>
    %cst_5 = arith.constant 5.400000e-01 : f32
    %25 = arith.mulf %1, %cst_5 : f32
    %cst_6 = arith.constant 0.000000e+00 : f32
    %26 = vector.broadcast %cst_6 : f32 to vector<1x256xf32>
    %27 = arith.cmpf oeq, %24, %26 : vector<1x256xf32>
    %28 = arith.extui %27 : vector<1x256xi1> to vector<1x256xi32>
    %29 = arith.sitofp %28 : vector<1x256xi32> to vector<1x256xf32>
    %cst_7 = arith.constant 9.99999993E-9 : f32
    %30 = vector.broadcast %cst_7 : f32 to vector<1x256xf32>
    %31 = arith.mulf %29, %30 : vector<1x256xf32>
    %32 = arith.addf %24, %31 : vector<1x256xf32>
    %33 = vector.broadcast %25 : f32 to vector<1x256xf32>
    %34 = arith.divf %33, %32 : vector<1x256xf32>
    %cst_8 = arith.constant 1.000000e-03 : f32
    %cst_9 = arith.constant 8.000000e+01 : f32
    %35 = vector.broadcast %cst_8 : f32 to vector<1x256xf32>
    %36 = arith.maximumf %35, %34 : vector<1x256xf32>
    %37 = vector.broadcast %cst_9 : f32 to vector<1x256xf32>
    %38 = arith.minimumf %37, %36 : vector<1x256xf32>
    %39 = vector.broadcast %5 : f32 to vector<1x256xf32>
    %40 = arith.subf %19, %39 : vector<1x256xf32>
    %41 = vector.broadcast %1 : f32 to vector<1x256xf32>
    %42 = arith.divf %40, %41 : vector<1x256xf32>
    %43 = arith.mulf %42, %38 : vector<1x256xf32>
    %44 = vector.broadcast %7 : f32 to vector<1x256xf32>
    %45 = arith.subf %16, %44 : vector<1x256xf32>
    %46 = vector.broadcast %3 : f32 to vector<1x256xf32>
    %47 = arith.divf %45, %46 : vector<1x256xf32>
    %48 = arith.mulf %47, %38 : vector<1x256xf32>
    %49 = vector.extract_strided_slice %21 {offsets = [1, 0], sizes = [1, 256], strides = [1, 1]} : vector<4x256xf32> to vector<1x256xf32>
    %50 = arith.addf %43, %49 : vector<1x256xf32>
    %51 = vector.extract_strided_slice %21 {offsets = [2, 0], sizes = [1, 256], strides = [1, 1]} : vector<4x256xf32> to vector<1x256xf32>
    %52 = arith.addf %48, %51 : vector<1x256xf32>
    %53 = vector.extract_strided_slice %21 {offsets = [3, 0], sizes = [1, 256], strides = [1, 1]} : vector<4x256xf32> to vector<1x256xf32>
    %54 = arith.addf %38, %53 : vector<1x256xf32>
    %55 = tpu.concatenate %43, %48, %38, %50, %52, %54 in 0 : vector<1x256xf32>, vector<1x256xf32>, vector<1x256xf32>, vector<1x256xf32>, vector<1x256xf32>, vector<1x256xf32> -> vector<6x256xf32>
    %c0_10 = arith.constant 0 : index
    %c0_11 = arith.constant 0 : index
    %c0_12 = arith.constant 0 : index
    %56 = vector.load %arg6[%c0_10, %c0_11, %c0_12] : memref<1x6x256xf32, #tpu.memory_space<vmem>>, vector<1x6x256xf32>
    %57 = vector.shape_cast %56 : vector<1x6x256xf32> to vector<6x256xf32>
    %58 = vector.shape_cast %55 : vector<6x256xf32> to vector<1x6x256xf32>
    tpu.vector_store %arg6[%c0_10, %c0_11, %c0_12], %58 {strides = array<i32>} : memref<1x6x256xf32, #tpu.memory_space<vmem>>, vector<1x6x256xf32>,
    %cst_13 = arith.constant 9.99999993E-9 : f32
    %59 = vector.broadcast %cst_13 : f32 to vector<1x256xf32>
    %60 = arith.addf %54, %59 : vector<1x256xf32>
    %61 = vector.broadcast %1 : f32 to vector<1x256xf32>
    %62 = arith.mulf %61, %50 : vector<1x256xf32>
    %63 = vector.broadcast %5 : f32 to vector<1x256xf32>
    %64 = arith.mulf %63, %54 : vector<1x256xf32>
    %65 = arith.addf %62, %64 : vector<1x256xf32>
    %66 = arith.divf %65, %60 : vector<1x256xf32>
    %67 = vector.broadcast %3 : f32 to vector<1x256xf32>
    %68 = arith.mulf %67, %52 : vector<1x256xf32>
    %69 = vector.broadcast %7 : f32 to vector<1x256xf32>
    %70 = arith.mulf %69, %54 : vector<1x256xf32>
    %71 = arith.addf %68, %70 : vector<1x256xf32>
    %72 = arith.divf %71, %60 : vector<1x256xf32>
    %73 = math.floor %66 : vector<1x256xf32>
    %74 = math.floor %72 : vector<1x256xf32>
    %cst_14 = arith.constant 1.000000e+00 : f32
    %75 = vector.broadcast %cst_14 : f32 to vector<1x256xf32>
    %76 = arith.addf %73, %75 : vector<1x256xf32>
    %cst_15 = arith.constant 1.000000e+00 : f32
    %77 = vector.broadcast %cst_15 : f32 to vector<1x256xf32>
    %78 = arith.addf %74, %77 : vector<1x256xf32>
    %79 = arith.subf %66, %73 : vector<1x256xf32>
    %80 = arith.subf %72, %74 : vector<1x256xf32>
    %cst_16 = arith.constant 1.000000e+00 : f32
    %81 = vector.broadcast %cst_16 : f32 to vector<1x256xf32>
    %82 = arith.subf %81, %79 : vector<1x256xf32>
    %cst_17 = arith.constant 1.000000e+00 : f32
    %83 = vector.broadcast %cst_17 : f32 to vector<1x256xf32>
    %84 = arith.subf %83, %80 : vector<1x256xf32>
    %cst_18 = arith.constant 0.000000e+00 : f32
    %85 = vector.broadcast %cst_18 : f32 to vector<1x256xf32>
    %86 = arith.cmpf oge, %73, %85 : vector<1x256xf32>
    %cst_19 = arith.constant 1.500000e+01 : f32
    %87 = vector.broadcast %cst_19 : f32 to vector<1x256xf32>
    %88 = arith.cmpf ole, %73, %87 : vector<1x256xf32>
    %89 = arith.andi %86, %88 : vector<1x256xi1>
    %cst_20 = arith.constant 0.000000e+00 : f32
    %90 = vector.broadcast %cst_20 : f32 to vector<1x256xf32>
    %91 = arith.cmpf oge, %76, %90 : vector<1x256xf32>
    %cst_21 = arith.constant 1.500000e+01 : f32
    %92 = vector.broadcast %cst_21 : f32 to vector<1x256xf32>
    %93 = arith.cmpf ole, %76, %92 : vector<1x256xf32>
    %94 = arith.andi %91, %93 : vector<1x256xi1>
    %cst_22 = arith.constant 0.000000e+00 : f32
    %95 = vector.broadcast %cst_22 : f32 to vector<1x256xf32>
    %96 = arith.cmpf oge, %74, %95 : vector<1x256xf32>
    %cst_23 = arith.constant 1.500000e+01 : f32
    %97 = vector.broadcast %cst_23 : f32 to vector<1x256xf32>
    %98 = arith.cmpf ole, %74, %97 : vector<1x256xf32>
    %99 = arith.andi %96, %98 : vector<1x256xi1>
    %cst_24 = arith.constant 0.000000e+00 : f32
    %100 = vector.broadcast %cst_24 : f32 to vector<1x256xf32>
    %101 = arith.cmpf oge, %78, %100 : vector<1x256xf32>
    %cst_25 = arith.constant 1.500000e+01 : f32
    %102 = vector.broadcast %cst_25 : f32 to vector<1x256xf32>
    %103 = arith.cmpf ole, %78, %102 : vector<1x256xf32>
    %104 = arith.andi %101, %103 : vector<1x256xi1>
    %105 = arith.andi %99, %89 : vector<1x256xi1>
    %106 = arith.mulf %84, %82 : vector<1x256xf32>
    %cst_26 = arith.constant 0.000000e+00 : f32
    %107 = vector.broadcast %cst_26 : f32 to vector<1x256xf32>
    %108 = arith.select %105, %106, %107 : vector<1x256xi1>, vector<1x256xf32>
    %109 = arith.andi %99, %94 : vector<1x256xi1>
    %110 = arith.mulf %84, %79 : vector<1x256xf32>
    %cst_27 = arith.constant 0.000000e+00 : f32
    %111 = vector.broadcast %cst_27 : f32 to vector<1x256xf32>
    %112 = arith.select %109, %110, %111 : vector<1x256xi1>, vector<1x256xf32>
    %113 = arith.andi %104, %89 : vector<1x256xi1>
    %114 = arith.mulf %80, %82 : vector<1x256xf32>
    %cst_28 = arith.constant 0.000000e+00 : f32
    %115 = vector.broadcast %cst_28 : f32 to vector<1x256xf32>
    %116 = arith.select %113, %114, %115 : vector<1x256xi1>, vector<1x256xf32>
    %117 = arith.andi %104, %94 : vector<1x256xi1>
    %118 = arith.mulf %80, %79 : vector<1x256xf32>
    %cst_29 = arith.constant 0.000000e+00 : f32
    %119 = vector.broadcast %cst_29 : f32 to vector<1x256xf32>
    %120 = arith.select %117, %118, %119 : vector<1x256xi1>, vector<1x256xf32>
    %121 = arith.addf %108, %112 : vector<1x256xf32>
    %122 = arith.addf %121, %116 : vector<1x256xf32>
    %123 = arith.addf %122, %120 : vector<1x256xf32>
    %cst_30 = arith.constant 0.999989986 : f32
    %124 = vector.broadcast %cst_30 : f32 to vector<1x256xf32>
    %125 = arith.cmpf oge, %123, %124 : vector<1x256xf32>
    %126 = arith.extui %125 : vector<1x256xi1> to vector<1x256xi32>
    %127 = arith.sitofp %126 : vector<1x256xi32> to vector<1x256xf32>
    %128 = arith.mulf %108, %127 : vector<1x256xf32>
    %129 = arith.mulf %112, %127 : vector<1x256xf32>
    %130 = arith.mulf %116, %127 : vector<1x256xf32>
    %131 = arith.mulf %120, %127 : vector<1x256xf32>
    %cst_31 = arith.constant 0.000000e+00 : f32
    %cst_32 = arith.constant 1.500000e+01 : f32
    %132 = vector.broadcast %cst_31 : f32 to vector<1x256xf32>
    %133 = arith.maximumf %132, %73 : vector<1x256xf32>
    %134 = vector.broadcast %cst_32 : f32 to vector<1x256xf32>
    %135 = arith.minimumf %134, %133 : vector<1x256xf32>
    %cst_33 = arith.constant 0.000000e+00 : f32
    %cst_34 = arith.constant 1.500000e+01 : f32
    %136 = vector.broadcast %cst_33 : f32 to vector<1x256xf32>
    %137 = arith.maximumf %136, %76 : vector<1x256xf32>
    %138 = vector.broadcast %cst_34 : f32 to vector<1x256xf32>
    %139 = arith.minimumf %138, %137 : vector<1x256xf32>
    %cst_35 = arith.constant 0.000000e+00 : f32
    %cst_36 = arith.constant 1.500000e+01 : f32
    %140 = vector.broadcast %cst_35 : f32 to vector<1x256xf32>
    %141 = arith.maximumf %140, %74 : vector<1x256xf32>
    %142 = vector.broadcast %cst_36 : f32 to vector<1x256xf32>
    %143 = arith.minimumf %142, %141 : vector<1x256xf32>
    %cst_37 = arith.constant 0.000000e+00 : f32
    %cst_38 = arith.constant 1.500000e+01 : f32
    %144 = vector.broadcast %cst_37 : f32 to vector<1x256xf32>
    %145 = arith.maximumf %144, %78 : vector<1x256xf32>
    %146 = vector.broadcast %cst_38 : f32 to vector<1x256xf32>
    %147 = arith.minimumf %146, %145 : vector<1x256xf32>
    %cst_39 = arith.constant 1.600000e+01 : f32
    %148 = vector.broadcast %cst_39 : f32 to vector<1x256xf32>
    %149 = arith.mulf %143, %148 : vector<1x256xf32>
    %150 = arith.addf %149, %135 : vector<1x256xf32>
    %151 = arith.fptosi %150 : vector<1x256xf32> to vector<1x256xi32>
    %cst_40 = arith.constant 1.600000e+01 : f32
    %152 = vector.broadcast %cst_40 : f32 to vector<1x256xf32>
    %153 = arith.mulf %143, %152 : vector<1x256xf32>
    %154 = arith.addf %153, %139 : vector<1x256xf32>
    %155 = arith.fptosi %154 : vector<1x256xf32> to vector<1x256xi32>
    %cst_41 = arith.constant 1.600000e+01 : f32
    %156 = vector.broadcast %cst_41 : f32 to vector<1x256xf32>
    %157 = arith.mulf %147, %156 : vector<1x256xf32>
    %158 = arith.addf %157, %135 : vector<1x256xf32>
    %159 = arith.fptosi %158 : vector<1x256xf32> to vector<1x256xi32>
    %cst_42 = arith.constant 1.600000e+01 : f32
    %160 = vector.broadcast %cst_42 : f32 to vector<1x256xf32>
    %161 = arith.mulf %147, %160 : vector<1x256xf32>
    %162 = arith.addf %161, %139 : vector<1x256xf32>
    %163 = arith.fptosi %162 : vector<1x256xf32> to vector<1x256xi32>
    %164 = tpu.iota {dimensions = array<i32: 0>} : vector<256x1xi32>
    %165 = vector.broadcast %164 : vector<256x1xi32> to vector<256x256xi32>
    %166 = vector.broadcast %151 : vector<1x256xi32> to vector<256x256xi32>
    %167 = arith.cmpi eq, %165, %166 : vector<256x256xi32>
    %cst_43 = arith.constant 0.000000e+00 : f32
    %168 = vector.shape_cast %128 : vector<1x256xf32> to vector<1x256xf32>
    %169 = vector.broadcast %168 : vector<1x256xf32> to vector<256x256xf32>
    %170 = vector.broadcast %cst_43 : f32 to vector<256x256xf32>
    %171 = arith.select %167, %169, %170 : vector<256x256xi1>, vector<256x256xf32>
    %172 = vector.broadcast %164 : vector<256x1xi32> to vector<256x256xi32>
    %173 = vector.broadcast %155 : vector<1x256xi32> to vector<256x256xi32>
    %174 = arith.cmpi eq, %172, %173 : vector<256x256xi32>
    %cst_44 = arith.constant 0.000000e+00 : f32
    %175 = vector.shape_cast %129 : vector<1x256xf32> to vector<1x256xf32>
    %176 = vector.broadcast %175 : vector<1x256xf32> to vector<256x256xf32>
    %177 = vector.broadcast %cst_44 : f32 to vector<256x256xf32>
    %178 = arith.select %174, %176, %177 : vector<256x256xi1>, vector<256x256xf32>
    %179 = arith.addf %171, %178 : vector<256x256xf32>
    %180 = vector.broadcast %164 : vector<256x1xi32> to vector<256x256xi32>
    %181 = vector.broadcast %159 : vector<1x256xi32> to vector<256x256xi32>
    %182 = arith.cmpi eq, %180, %181 : vector<256x256xi32>
    %cst_45 = arith.constant 0.000000e+00 : f32
    %183 = vector.shape_cast %130 : vector<1x256xf32> to vector<1x256xf32>
    %184 = vector.broadcast %183 : vector<1x256xf32> to vector<256x256xf32>
    %185 = vector.broadcast %cst_45 : f32 to vector<256x256xf32>
    %186 = arith.select %182, %184, %185 : vector<256x256xi1>, vector<256x256xf32>
    %187 = arith.addf %179, %186 : vector<256x256xf32>
    %188 = vector.broadcast %164 : vector<256x1xi32> to vector<256x256xi32>
    %189 = vector.broadcast %163 : vector<1x256xi32> to vector<256x256xi32>
    %190 = arith.cmpi eq, %188, %189 : vector<256x256xi32>
    %cst_46 = arith.constant 0.000000e+00 : f32
    %191 = vector.shape_cast %131 : vector<1x256xf32> to vector<1x256xf32>
    %192 = vector.broadcast %191 : vector<1x256xf32> to vector<256x256xf32>
    %193 = vector.broadcast %cst_46 : f32 to vector<256x256xf32>
    %194 = arith.select %190, %192, %193 : vector<256x256xi1>, vector<256x256xf32>
    %195 = arith.addf %187, %194 : vector<256x256xf32>
    %c0_47 = arith.constant 0 : index
    %c0_48 = arith.constant 0 : index
    %c0_49 = arith.constant 0 : index
    %196 = vector.load %arg3[%c0_47, %c0_48, %c0_49] : memref<1x4x256xf32, #tpu.memory_space<vmem>>, vector<1x4x256xf32>
    %197 = vector.shape_cast %196 : vector<1x4x256xf32> to vector<4x256xf32>
    %cst_50 = arith.constant dense<0.000000e+00> : vector<4x256xf32>
    %198 = tpu.matmul %197, %195, %cst_50 {dimension_numbers = #tpu.dot_dimension_numbers<[1], [0], [0], [1], [0, 0, 1, 1], [], []>} : vector<4x256xf32>, vector<256x256xf32>, vector<4x256xf32> -> vector<4x256xf32>
    %c0_51 = arith.constant 0 : index
    %c0_52 = arith.constant 0 : index
    %c0_53 = arith.constant 0 : index
    %199 = vector.load %arg5[%c0_51, %c0_52, %c0_53] : memref<1x4x256xf32, #tpu.memory_space<vmem>>, vector<1x4x256xf32>
    %200 = vector.shape_cast %199 : vector<1x4x256xf32> to vector<4x256xf32>
    %201 = vector.shape_cast %198 : vector<4x256xf32> to vector<1x4x256xf32>
    tpu.vector_store %arg5[%c0_51, %c0_52, %c0_53], %201 {strides = array<i32>} : memref<1x4x256xf32, #tpu.memory_space<vmem>>, vector<1x4x256xf32>,
    return
  }
  func.func @transform_0(%arg0: i32, %arg1: i32) -> (i32, i32) {
    %c0_i32 = arith.constant 0 : i32
    %c0_i32_0 = arith.constant 0 : i32
    %c0_i32_1 = arith.constant 0 : i32
    return %c0_i32, %c0_i32_0 : i32, i32
  }
  func.func @transform_1(%arg0: i32, %arg1: i32) -> (i32, i32, i32) {
    %c0_i32 = arith.constant 0 : i32
    %c0_i32_0 = arith.constant 0 : i32
    %c0_i32_1 = arith.constant 0 : i32
    return %arg0, %c0_i32, %c0_i32_0 : i32, i32, i32
  }
  func.func @transform_2(%arg0: i32, %arg1: i32) -> (i32, i32, i32) {
    %c0_i32 = arith.constant 0 : i32
    %c0_i32_0 = arith.constant 0 : i32
    return %arg0, %c0_i32, %arg1 : i32, i32, i32
  }
  func.func @transform_3(%arg0: i32, %arg1: i32) -> (i32, i32, i32) {
    %c0_i32 = arith.constant 0 : i32
    %c0_i32_0 = arith.constant 0 : i32
    return %arg0, %c0_i32, %arg1 : i32, i32, i32
  }
  func.func @transform_4(%arg0: i32, %arg1: i32) -> (i32, i32, i32) {
    %c0_i32 = arith.constant 0 : i32
    %c0_i32_0 = arith.constant 0 : i32
    return %arg0, %c0_i32, %arg1 : i32, i32, i32
  }
}

</mosaic_0001>

<bundles_post_ra>
// kernel: tpu_custom_call.1
= control target key start
LH: loop header
LB: loop body
LE: loop exit
PB: predicated region body
PF: predicated region fallthrough
CT: control target
= control target key end

     0   :  { %s3441_s0 = inlined_call_operand.hbm [shape: f32[2,4], index: 0, kind: input, shape index: {}]   ;;  %s3442_s1 = inlined_call_operand.hbm [shape: f32[2,4,256], index: 1, kind: input, shape index: {}]   ;;  %s3443_s2 = inlined_call_operand.hbm [shape: f32[2,4,256], index: 2, kind: input, shape index: {}]   ;;  %s3444_s3 = inlined_call_operand.hbm [shape: f32[2,4,256], index: 3, kind: output, shape index: {0}]   ;;  %s3445_s4 = inlined_call_operand.vmem [shape: f32[2,6,256], index: 4, kind: output, shape index: {1}]  }
   0x1   :  { %3448 = sst [smem:[#allocation16_spill]] %s3441_s0 }
   0x2   :  { %10 = vsyncpa [#allocation5], 0 }
   0x3   :  { %11 = vsyncpa [#allocation3], 0 }
   0x4   :  { %13 = vsyncpa [#allocation3 + $0x1], 0 }
   0x5   :  { %14 = vsyncpa [#allocation8], 0 }
   0x6   :  { %16 = vsyncpa [#allocation8 + $0x1], 0 }
   0x7   :  { %17 = vsyncpa [#allocation4], 0 }
   0x8   :  { %19 = vsyncpa [#allocation4 + $0x1], 0  ;;  %s2050_s15 = smov 0   ;;  %s2052_s16 = smov 0  }
   0x9   :  { %s2054_s17 = smov 0   ;;  %s2056_s18 = smov 0  }
   0xa   :  { %s2058_s19 = smov 0   ;;  %s2060_s20 = smov 0  }
   0xb LB: > { %3449 = sst [smem:[#allocation14_spill]] %s2016_s19  ;;  %s1691_s21 = sadd.s32 4294967295, %s2020_s20   ;;  %s2020_s20 = sphi %s2060_s20, %s25_s20   ;;  %s2016_s19 = sphi %s2058_s19, %s3488_s19   ;;  %s2012_s18 = sphi %s2056_s18, %s3487_s18   ;;  %s2008_s17 = sphi %s2054_s17, %s3491_s17   ;;  %s2004_s16 = sphi %s2052_s16, %s3490_s16   ;;  %s2000_s15 = sphi %s2050_s15, %s3489_s15  }
   0xc   : > { %s1692_s22 = sadd.s32 4294967294, %s2020_s20   ;;  %p78_p0 = scmp.ne.s32.totalorder %s2004_s16, %s2000_s15 }
   0xd   : > { %p2084_p1 = scmp.eq.s32.totalorder %s1691_s21, 0  ;;  %p2088_p2 = scmp.eq.s32.totalorder %s1691_s21, 1 }
   0xe   : > { %p138_p3 = scmp.eq.s32.totalorder %s1692_s22, 1  ;;  %p1693_p5 = scmp.ge.s32.totalorder %s2020_s20, 1 }
   0xf   : > { %p2094_p4 = por %p2084_p1, %p78_p0  ;;  %p173_p7 = scmp.lt.s32.totalorder %s2020_s20, 3 }
  0x10   : > { %p2099_p6 = por %p138_p3, %p78_p0  ;;  %s3454_s0 = sld [smem:[#allocation16_spill]] }
  0x11   : > { %p2107_p8 = pnand %p1693_p5, %p173_p7  ;;  %s37_s5 = sadd.s32 1, %s2016_s19 }
  0x12   : > { %s65_s6 = sadd.s32 1, %s2008_s17  ;;  %p39_p12 = scmp.ge.s32.totalorder %s37_s5, 2 }
  0x13   : > { %p1773_p10 = pneg %p2107_p8  ;;  %s2022_s7 = smov [#allocation2]  }
  0x14   : > { %s3493_s5 = smov (%p39_p12, %s37_s5), 0  ;;  %p72_p13 = scmp.ne.s32.totalorder %s2008_s17, %s2004_s16 }
  0x15   : > { %p1774_p11 = pnand %p1773_p10, %p2084_p1  ;;  %3456 = sst [smem:[#allocation15_spill]] %s3493_s5 }
  0x16   : > { %s185_s29 = sshll.u32 %s3454_s0, 4  ;;  %p73_p0 = scmp.eq.s32.totalorder %s2020_s20, 0  ;;  %s186_s29 = int_to_ptr.hbm [resolvable:$true] %s185_s29 }
  0x17   : > { %1776 = dma.hbm_to_smem (!%p1774_p11), %s186_s29, 32, %s2022_s7, [#allocation5]  }
  0x18   : > { %s62_s8 = ssub.s32 %s2016_s19, %s3493_s5  ;;  %p1789_p3 = scmp.lt.s32.totalorder %s2020_s20, 2 }
  0x19   : > { %p63_p5 = scmp.eq.s32.totalorder %s62_s8, 0  ;;  %p74_p7 = por %p73_p0, %p72_p13 }
  0x1a   : > { %p2128_p9 = por %p2088_p2, %p72_p13  ;;  %s196_s10 = sand.u32 1, %s2008_s17  }
  0x1b   : > { %s2134_s11 = scalar_select %p63_p5, %s2008_s17, %s65_s6  }
  0x1c   : > { %s1696_s12 = sshll.u32 %s196_s10, 3  ;;  %s1719_s13 = sshll.u32 %s2016_s19, 3 }
  0x1d   : > { %s205_s22 = scalar_lea.hbm %s3442_s1, %s1719_s13  ;;  %s200_s27 = scalar_lea.vmem [#allocation6], %s1696_s12 }
  0x1e   : > { %s209_s28 = sshll.u32 %s200_s27, 4  ;;  %s207_s29 = sshll.u32 %s205_s22, 4  ;;  %s210_s28 = int_to_ptr.vmem [resolvable:$true] %s209_s28  ;;  %s208_s29 = int_to_ptr.hbm [resolvable:$true] %s207_s29 }
  0x1f   : > { %p1778_p10 = pnand %p1789_p3, %p74_p7  ;;  %s227_s8 = scalar_lea.hbm %s3443_s2, %s1719_s13 }
  0x20   : > { %s197_s0 = scalar_lea.sflag [#allocation3], %s196_s10  ;;  %s229_s6 = sshll.u32 %s227_s8, 4  ;;  %s230_s6 = int_to_ptr.hbm [resolvable:$true] %s229_s6 }
  0x21   : > { %1780 = dma.hbm_to_vmem [thread:$0]  (!%p1778_p10), %s208_s29, 128, %s210_s28, %s197_s0  }
  0x22   : > { %s220_s5 = scalar_lea.vmem [#allocation7], %s1696_s12  ;;  %s217_s14 = scalar_lea.sflag [#allocation8], %s196_s10 }
  0x23   : > { %s231_s19 = sshll.u32 %s220_s5, 4  ;;  %240 = sbr.rel (%p2107_p8) target bundleno = 465 (0x1d1), region = 32  ;;  %s232_s19 = int_to_ptr.vmem [resolvable:$true] %s231_s19 }
  0x24   : > { %1783 = dma.hbm_to_vmem [thread:$0]  (!%p1778_p10), %s230_s6, 128, %s232_s19, %s217_s14  }
  0x28   : > { %1983 = dma.done.wait (%p2084_p1), [#allocation5], 32  }
  0x29   : > { %1985 = vsyncadd (%p2084_p1), [#allocation5], 4294967264  ;;  %s2152_s13 = sand.u32 1, %s2004_s16  }
  0x2a   : > { %s2155_s0 = sshll.u32 %s2152_s13, 3  ;;  %s248_s5 = scalar_lea.sflag [#allocation3], %s2152_s13 }
  0x2b   : > { %s251_s19 = scalar_lea.vmem [#allocation6], %s2155_s0 }
  0x2c   : > { %1987 = dma.done.wait (%p2094_p4), %s248_s5, 128  }
  0x2d   : > { %1989 = vsyncadd (%p2094_p4), %s248_s5, 4294967168  ;;  %s258_s23 = scalar_lea.sflag [#allocation8], %s2152_s13  ;;  %s261_s30 = scalar_lea.vmem [#allocation7], %s2155_s0 }
  0x2e   : > { %1991 = dma.done.wait (%p2094_p4), %s258_s23, 128  }
  0x2f   : > { %1993 = vsyncadd (%p2094_p4), %s258_s23, 4294967168 }
  0x30   : > { %267 = sfence }
  0x31   : > { %s2170_s10 = sshll.u32 %s2012_s18, 7  ;;  %v2172_v0 = vld [vmem:[%s261_s30] sm:$0xff]  ;;  %v322_v1 = vlaneseq  ;;  %v2023_v2 = vmov 16.0   ;;  %v2024_v4 = vmov 0.0   ;;  %p305_p1 = scmp.lt.s32.totalorder %s2012_s18, 1 }
  0x32   : > { %s2175_s12 = sld [smem:[#allocation2 + %s2170_s10]]  ;;  %s316_s21 = sadd.s32 1, %s2170_s10  ;;  %1843 = vrcp.f32 %v2023_v2  ;;  %v348_v3 = vmul.f32 16.0, %v2172_v0  ;;  %v1711_v55 = vrot.slane %v2172_v0, 11 }
  0x33   : > { %s317_s22 = sld [smem:[#allocation2 + %s316_s21]]  ;;  %v2181_v6 = vand.u32 127, %v322_v1  ;;  %s318_s25 = sadd.s32 2, %s2170_s10 }
  0x34   : > { %vm350_vm0 = vcmp.eq.f32.partialorder %v348_v3, 0.0  ;;  %s320_s27 = sadd.s32 3, %s2170_s10  ;;  %s2199_s29 = sld [smem:[#allocation2 + %s318_s25]] }
  0x35   : > { %v1710_v5 = vsel %vm350_vm0, 1.0, %v2024_v4  ;;  %v324_v12 = vadd.s32 128, %v2181_v6  ;;  %v325_v21 = vcvt.s32.f32 %v2181_v6  ;;  %s2201_s24 = sld [smem:[#allocation2 + %s320_s27]]  ;;  %s1504_s25 = scalar_lea.sflag [#allocation4], %s2152_s13 }
  0x36   : > { %v353_v7 = vmul.f32 1e-08, %v1710_v5  ;;  %s306_s7 = scalar_select %p305_p1, %s2012_s18, 1 }
  0x37   : > { %v326_v16 = vcvt.s32.f32 %v324_v12 }
  0x38   : > { %v1844_v8 = vpop.eup %1843  ;;  %v354_v9 = vadd.f32 %v353_v7, %v348_v3  ;;  %v2184_v10 = vstv %s2175_s12  ;;  %s349_s28 = smul.f32 0.54, %s2175_s12  ;;  %s1721_s8 = sshll.u32 %s306_s7, 4 }
  0x39   : > { %v333_v11 = vmul.f32 16.0, %v1844_v8  ;;  %1845 = vrcp.f32 %v2184_v10  ;;  %v2188_v14 = vstv %s317_s22  ;;  %vm337_vm1 = vweird.f32 %v1844_v8  ;;  %s312_s5 = scalar_lea.vmem %s3445_s4, %s1721_s8  ;;  %s290_s12 = scalar_lea.vmem [#allocation9], %s2155_s0 }
  0x3a   : > { %1847 = vrcp.f32 %v354_v9  ;;  %v365_v25 = vand.u32 2147483647, %v354_v9  ;;  %v367_v26 = vand.u32 2147483648, %v354_v9  ;;  %vm361_vm2 = vweird.f32 %v354_v9  ;;  %s1528_s21 = sshll.u32 %s290_s12, 4  ;;  %s1950_s0 = scalar_lea.hbm %s3444_s3, 16  ;;  %s1529_s21 = int_to_ptr.vmem [resolvable:$true] %s1528_s21 }
  0x3b   : > { %v334_v13 = vsub.f32 1.0, %v333_v11  ;;  %1849 = vrcp.f32 %v2188_v14  ;;  %vm382_vm4 = vweird.f32 %v2184_v10  ;;  %v355_v35 = vstv %s349_s28 }
  0x3c   : > { %vm366_vm6 = vcmp.eq.f32.partialorder %v365_v25, 8.507059e+37  ;;  %v368_v37 = vor.u32 1.1754944e-38, %v367_v26  ;;  %v386_v38 = vand.u32 2147483647, %v2184_v10  ;;  %v388_v42 = vand.u32 2147483648, %v2184_v10 }
  0x3d   : > { %v335_v15 = vmul.f32 %v1844_v8, %v334_v13  ;;  %vm409_vm8 = vweird.f32 %v2188_v14  ;;  %v415_v43 = vand.u32 2147483648, %v2188_v14  ;;  %v413_v50 = vand.u32 2147483647, %v2188_v14 }
  0x3e   : > { %v373_v56 = vstv %s2199_s29  ;;  %vm387_vm12 = vcmp.eq.f32.partialorder %v386_v38, 8.507059e+37  ;;  %v389_v57 = vor.u32 1.1754944e-38, %v388_v42  ;;  %v400_v58 = vstv %s2201_s24 }
  0x3f   : > { %v2191_v17 = vpop.eup %1845  ;;  %v336_v18 = vadd.f32 %v1844_v8, %v335_v15  ;;  %v416_v62 = vor.u32 1.1754944e-38, %v415_v43  ;;  %vm414_vm13 = vcmp.eq.f32.partialorder %v413_v50, 8.507059e+37 }
  0x40   : > { %v1848_v19 = vpop.eup %1847  ;;  %v378_v20 = vmul.f32 %v2191_v17, %v2184_v10  ;;  %vm383_vm7 = vweird.f32 %v2191_v17 }
  0x41   : > { %v338_v22 = vsel %vm337_vm1, %v1844_v8, %v336_v18  ;;  %v357_v23 = vmul.f32 %v1848_v19, %v354_v9  ;;  %v1850_v28 = vpop.eup %1849  ;;  %vm362_vm3 = vweird.f32 %v1848_v19  ;;  %vm2220_vm10 = vmor %vm382_vm4, %vm383_vm7 }
  0x42   : > { %v340_v24 = vmul.f32 %v338_v22, %v326_v16  ;;  %v379_v27 = vsub.f32 1.0, %v378_v20  ;;  %v405_v31 = vmul.f32 %v1850_v28, %v2188_v14  ;;  %v339_v32 = vmul.f32 %v338_v22, %v325_v21  ;;  %vm2206_vm5 = vmor %vm361_vm2, %vm362_vm3 }
  0x43   : > { %v358_v29 = vsub.f32 1.0, %v357_v23  ;;  %vm410_vm9 = vweird.f32 %v1850_v28  ;;  %v424_v20 = vperm.slane %v2172_v0, 5  ;;  %v430_v22 = vperm.slane %v2172_v0, 6 }
  0x44   : > { %v342_v30 = vfloor.f32 %v340_v24  ;;  %v380_v34 = vmul.f32 %v2191_v17, %v379_v27  ;;  %v406_v41 = vsub.f32 1.0, %v405_v31  ;;  %v341_v44 = vfloor.f32 %v339_v32  ;;  %vm2225_vm11 = vmor %vm409_vm8, %vm410_vm9 }
  0x45   : > { %v359_v33 = vmul.f32 %v1848_v19, %v358_v29 }
  0x46   : > { %v344_v39 = vmul.f32 16.0, %v342_v30  ;;  %v381_v46 = vadd.f32 %v2191_v17, %v380_v34  ;;  %v407_v47 = vmul.f32 %v1850_v28, %v406_v41  ;;  %v343_v59 = vmul.f32 16.0, %v341_v44 }
  0x47   : > { %v360_v40 = vadd.f32 %v1848_v19, %v359_v33  ;;  %v402_v6 = vsub.f32 %v342_v30, %v400_v58  ;;  %v401_v18 = vsub.f32 %v341_v44, %v400_v58  ;;  %v423_v33 = vperm.slane %v2172_v0, 1 }
  0x48   : > { %v346_v51 = vsub.f32 %v326_v16, %v344_v39  ;;  %v408_v53 = vadd.f32 %v1850_v28, %v407_v47  ;;  %v385_v61 = vsel %vm2220_vm10, %v2191_v17, %v381_v46  ;;  %v345_v7 = vsub.f32 %v325_v21, %v343_v59 }
  0x49   : > { %v364_v45 = vsel %vm2206_vm5, %v1848_v19, %v360_v40  ;;  %v390_v5 = vsel %vm387_vm12, %v389_v57, %v385_v61 }
  0x4a   : > { %v369_v48 = vsel %vm366_vm6, %v368_v37, %v364_v45  ;;  %v412_v63 = vsel %vm2225_vm11, %v1850_v28, %v408_v53  ;;  %v375_v3 = vsub.f32 %v346_v51, %v373_v56  ;;  %v374_v16 = vsub.f32 %v345_v7, %v373_v56 }
  0x4b   : > { %v370_v52 = vmul.f32 %v369_v48, %v355_v35  ;;  %v417_v8 = vsel %vm414_vm13, %v416_v62, %v412_v63  ;;  %v429_v37 = vperm.slane %v2172_v0, 2  ;;  %v2292_v62 = vshrl.u32 %v322_v1, 7 }
  0x4c   : > { %v392_v11 = vmul.f32 %v390_v5, %v375_v3  ;;  %v419_v15 = vmul.f32 %v417_v8, %v402_v6  ;;  %v391_v23 = vmul.f32 %v390_v5, %v374_v16  ;;  %v418_v26 = vmul.f32 %v417_v8, %v401_v18 }
  0x4d   : > { %v371_v60 = vmax.f32 %v370_v52, 0.001  ;;  %v2304_v1 = vadd.s32 248, %v2292_v62 }
  0x4f   : > { %v372_v2 = vmin.f32 %v371_v60, 80.0 }
  0x51   : > { %v2237_v9 = vadd.f32 %v1711_v55, %v372_v2  ;;  %v2239_v12 = vperm.slane %v372_v2, 4  ;;  %v2250_v24 = vperm.slane %v372_v2, 0 }
  0x53   : > { %v479_v13 = vadd.f32 1e-08, %v2237_v9  ;;  %v2243_v19 = vmul.f32 %v2239_v12, %v392_v11  ;;  %v2247_v21 = vmul.f32 %v419_v15, %v2239_v12  ;;  %v482_v25 = vmul.f32 %v2237_v9, %v373_v56 }
  0x54   : > { %v527_v29 = vmul.f32 %v2237_v9, %v400_v58  ;;  %v2261_v32 = vmul.f32 %v2250_v24, %v391_v23  ;;  %v2265_v36 = vmul.f32 %v418_v26, %v2250_v24  ;;  %v2301_v11 = vadd.s32 120, %v2292_v62 }
  0x55   : > { %v492_v17 = vperm.slane %v479_v13, 4  ;;  %v491_v27 = vperm.slane %v479_v13, 0  ;;  %v2254_v28 = vadd.f32 %v424_v20, %v2243_v19  ;;  %v2258_v30 = vadd.f32 %v430_v22, %v2247_v21 }
  0x56   : > { %v485_v34 = vperm.slane %v482_v25, 4  ;;  %v530_v40 = vperm.slane %v527_v29, 4  ;;  %v2273_v44 = vadd.f32 %v423_v33, %v2261_v32  ;;  %v2278_v0 = vadd.f32 %v429_v37, %v2265_v36 }
  0x57   : > { %1851 = vrcp.f32 %v492_v17  ;;  %v481_v38 = vmul.f32 %v2254_v28, %v2184_v10  ;;  %vm515_vm14 = vweird.f32 %v492_v17  ;;  %v521_v39 = vand.u32 2147483648, %v492_v17 }
  0x58   : > { %1853 = vrcp.f32 %v491_v27  ;;  %v519_v42 = vand.u32 2147483647, %v492_v17  ;;  %v526_v43 = vmul.f32 %v2258_v30, %v2188_v14  ;;  %v480_v53 = vmul.f32 %v2273_v44, %v2184_v10 }
  0x59   : > { %v522_v48 = vor.u32 1.1754944e-38, %v521_v39  ;;  %v489_v50 = vadd.f32 %v485_v34, %v481_v38  ;;  %v484_v54 = vperm.slane %v482_v25, 0  ;;  %v504_v56 = vand.u32 2147483647, %v491_v27 }
  0x5a   : > { %vm520_vm1 = vcmp.eq.f32.partialorder %v519_v42, 8.507059e+37  ;;  %v534_v52 = vadd.f32 %v530_v40, %v526_v43  ;;  %v506_v58 = vand.u32 2147483648, %v491_v27  ;;  %v525_v59 = vmul.f32 %v2278_v0, %v2188_v14 }
  0x5b   : > { %v529_v60 = vperm.slane %v527_v29, 0  ;;  %v488_v10 = vadd.f32 %v484_v54, %v480_v53  ;;  %vm500_vm2 = vweird.f32 %v491_v27  ;;  %vm2296_vm4 = vcmp.eq.f32.partialorder %v504_v56, 8.507059e+37 }
  0x5c   : > { %v507_v14 = vor.u32 1.1754944e-38, %v506_v58  ;;  %v2307_v13 = vadd.s32 112, %v2292_v62  ;;  %v2331_v38 = vadd.s32 240, %v2292_v62  ;;  %v2338_v43 = vadd.s32 104, %v2292_v62 }
  0x5d   : > { %v1852_v31 = vpop.eup %1851  ;;  %v533_v8 = vadd.f32 %v529_v60, %v525_v59  ;;  %v2355_v54 = vadd.s32 232, %v2292_v62 }
  0x5e   : > { %v511_v35 = vmul.f32 %v1852_v31, %v492_v17  ;;  %vm516_vm15 = vweird.f32 %v1852_v31  ;;  %v2275_v45 = vpop.eup %1853 }
  0x5f   : > { %vm2280_vm0 = vmor %vm515_vm14, %vm516_vm15  ;;  %v496_v49 = vmul.f32 %v2275_v45, %v491_v27  ;;  %vm501_vm3 = vweird.f32 %v2275_v45 }
  0x60   : > { %v512_v41 = vsub.f32 1.0, %v511_v35  ;;  %vm2311_vm5 = vmor %vm500_vm2, %vm501_vm3 }
  0x61   : > { %v497_v55 = vsub.f32 1.0, %v496_v49 }
  0x62   : > { %v513_v46 = vmul.f32 %v1852_v31, %v512_v41 }
  0x63   : > { %v498_v63 = vmul.f32 %v2275_v45, %v497_v55  ;;  %v2358_v55 = vadd.s32 96, %v2292_v62 }
  0x64   : > { %v514_v51 = vadd.f32 %v1852_v31, %v513_v46 }
  0x65   : > { %v499_v15 = vadd.f32 %v2275_v45, %v498_v63  ;;  %v2367_v63 = vadd.s32 224, %v2292_v62 }
  0x66   : > { %v518_v57 = vsel %vm2280_vm0, %v1852_v31, %v514_v51 }
  0x67   : > { %v523_v61 = vsel %vm520_vm1, %v522_v48, %v518_v57  ;;  %v503_v31 = vsel %vm2311_vm5, %v2275_v45, %v499_v15 }
  0x68   : > { %v524_v2 = vmul.f32 %v523_v61, %v489_v50  ;;  %v536_v3 = vmul.f32 %v534_v52, %v523_v61  ;;  %v508_v48 = vsel %vm2296_vm4, %v507_v14, %v503_v31 }
  0x69   : > { %v509_v52 = vmul.f32 %v508_v48, %v488_v10  ;;  %v2360_v56 = vmul.f32 %v533_v8, %v508_v48 }
  0x6a   : > { %v538_v6 = vfloor.f32 %v524_v2  ;;  %v540_v7 = vfloor.f32 %v536_v3 }
  0x6c   : > { %v542_v16 = vadd.f32 1.0, %v538_v6  ;;  %v544_v17 = vadd.f32 1.0, %v540_v7  ;;  %v546_v18 = vsub.f32 %v524_v2, %v538_v6  ;;  %v548_v20 = vsub.f32 %v536_v3, %v540_v7 }
  0x6d   : > { %vm554_vm6 = vcmp.ge.f32.partialorder %v538_v6, 0.0  ;;  %vm556_vm7 = vcmp.le.f32.partialorder %v538_v6, 15.0  ;;  %vm566_vm8 = vcmp.ge.f32.partialorder %v540_v7, 0.0  ;;  %vm568_vm9 = vcmp.le.f32.partialorder %v540_v7, 15.0 }
  0x6e   : > { %v550_v23 = vsub.f32 1.0, %v546_v18  ;;  %v552_v25 = vsub.f32 1.0, %v548_v20  ;;  %vm2315_vm10 = vmand %vm554_vm6, %vm556_vm7  ;;  %vm560_vm11 = vcmp.ge.f32.partialorder %v542_v16, 0.0  ;;  %vm562_vm12 = vcmp.le.f32.partialorder %v542_v16, 15.0 }
  0x6f   : > { %vm2319_vm13 = vmand %vm560_vm11, %vm562_vm12  ;;  %vm572_vm14 = vcmp.ge.f32.partialorder %v544_v17, 0.0  ;;  %vm574_vm15 = vcmp.le.f32.partialorder %v544_v17, 15.0  ;;  %v622_v27 = vmax.f32 %v538_v6, 0.0  ;;  %v626_v37 = vmax.f32 %v542_v16, 0.0 }
  0x70   : > { %vm2326_vm0 = vmand %vm566_vm8, %vm568_vm9  ;;  %v580_v34 = vmul.f32 %v552_v25, %v550_v23  ;;  %v586_v35 = vmul.f32 %v552_v25, %v546_v18  ;;  %v592_v40 = vmul.f32 %v550_v23, %v548_v20  ;;  %v630_v41 = vmax.f32 %v540_v7, 0.0 }
  0x71   : > { %vm2333_vm1 = vmand %vm572_vm14, %vm574_vm15  ;;  %v634_v42 = vmax.f32 %v544_v17, 0.0  ;;  %v598_v45 = vmul.f32 %v548_v20, %v546_v18  ;;  %v624_v46 = vmin.f32 %v622_v27, 15.0  ;;  %v628_v47 = vmin.f32 %v626_v37, 15.0 }
  0x72   : > { %vm578_vm2 = vmand %vm2326_vm0, %vm2315_vm10  ;;  %v632_v50 = vmin.f32 %v630_v41, 15.0  ;;  %v2369_v2 = vfloor.f32 %v509_v52  ;;  %v2372_v3 = vfloor.f32 %v2360_v56 }
  0x73   : > { %v582_v49 = vsel %vm578_vm2, %v580_v34, 0.0  ;;  %vm584_vm3 = vmand %vm2326_vm0, %vm2319_vm13  ;;  %v636_v51 = vmin.f32 %v634_v42, 15.0 }
  0x74   : > { %v588_v53 = vsel %vm584_vm3, %v586_v35, 0.0  ;;  %vm590_vm5 = vmand %vm2333_vm1, %vm2315_vm10  ;;  %v638_v59 = vmul.f32 16.0, %v632_v50  ;;  %v2375_v8 = vadd.f32 1.0, %v2369_v2  ;;  %v2378_v15 = vadd.f32 1.0, %v2372_v3 }
  0x75   : > { %v594_v57 = vsel %vm590_vm5, %v592_v40, 0.0  ;;  %vm596_vm4 = vmand %vm2333_vm1, %vm2319_vm13  ;;  %v602_v58 = vadd.f32 %v588_v53, %v582_v49  ;;  %v648_v60 = vmul.f32 16.0, %v636_v51  ;;  %v2381_v16 = vsub.f32 %v509_v52, %v2369_v2 }
  0x76   : > { %v600_v61 = vsel %vm596_vm4, %v598_v45, 0.0  ;;  %v640_v5 = vadd.f32 %v638_v59, %v624_v46  ;;  %v644_v6 = vadd.f32 %v638_v59, %v628_v47 }
  0x77   : > { %v604_v10 = vadd.f32 %v602_v58, %v594_v57  ;;  %v650_v7 = vadd.f32 %v648_v60, %v624_v46  ;;  %v654_v14 = vadd.f32 %v648_v60, %v628_v47 }
  0x78   : > { %vm1728_vm6 = vcmp.lt.s32.totalorder %v640_v5, 0  ;;  %v1729_v18 = vceil.f32 %v640_v5  ;;  %v1730_v20 = vfloor.f32 %v640_v5  ;;  %vm1738_vm7 = vcmp.lt.s32.totalorder %v644_v6, 0 }
  0x79   : > { %v606_v17 = vadd.f32 %v604_v10, %v600_v61  ;;  %v1739_v22 = vceil.f32 %v644_v6  ;;  %v1740_v23 = vfloor.f32 %v644_v6  ;;  %vm1748_vm8 = vcmp.lt.s32.totalorder %v650_v7, 0 }
  0x7a   : > { %v1731_v25 = vsel %vm1728_vm6, %v1729_v18, %v1730_v20  ;;  %v1749_v26 = vceil.f32 %v650_v7  ;;  %v1750_v29 = vfloor.f32 %v650_v7  ;;  %vm1758_vm10 = vcmp.lt.s32.totalorder %v654_v14, 0 }
  0x7b   : > { %vm608_vm9 = vcmp.ge.f32.partialorder %v606_v17, 0.99999  ;;  %v1732_v31 = vcvt.f32.s32 %v1731_v25  ;;  %v1741_v33 = vsel %vm1738_vm7, %v1739_v22, %v1740_v23  ;;  %v1759_v42 = vceil.f32 %v654_v14 }
  0x7c   : > { %v1713_v27 = vsel %vm608_vm9, 1.0, %v2024_v4  ;;  %v1742_v40 = vcvt.f32.s32 %v1741_v33  ;;  %v1751_v41 = vsel %vm1748_vm8, %v1749_v26, %v1750_v29  ;;  %v1760_v45 = vfloor.f32 %v654_v14 }
  0x7d   : > { %v614_v34 = vmul.f32 %v1713_v27, %v582_v49  ;;  %v616_v35 = vmul.f32 %v1713_v27, %v588_v53  ;;  %v618_v37 = vmul.f32 %v1713_v27, %v594_v57  ;;  %v620_v39 = vmul.f32 %v1713_v27, %v600_v61 }
  0x7e   : > { %v1752_v46 = vcvt.f32.s32 %v1751_v41  ;;  %v2384_v47 = vperm.slane %v1732_v31, 0  ;;  %v1761_v51 = vsel %vm1758_vm10, %v1759_v42, %v1760_v45  ;;  %v2390_v52 = vperm.slane %v1742_v40, 0 }
  0x7f   : > { %v2386_v48 = vperm.slane %v614_v34, 0  ;;  %v2388_v50 = vperm.slane %v616_v35, 0  ;;  %v2392_v58 = vperm.slane %v618_v37, 0  ;;  %v2394_v49 = vperm.slane %v620_v39, 0 }
  0x80   : > { %v1762_v53 = vcvt.f32.s32 %v1761_v51  ;;  %vm723_vm11 = vcmp.eq.s32.totalorder %v2301_v11, %v2384_v47  ;;  %v2398_v57 = vperm.slane %v1752_v46, 0  ;;  %vm755_vm12 = vcmp.eq.s32.totalorder %v2304_v1, %v2384_v47 }
  0x81   : > { %v789_v59 = vsel %vm723_vm11, %v2386_v48, 0.0  ;;  %vm855_vm13 = vcmp.eq.s32.totalorder %v2301_v11, %v2390_v52  ;;  %v821_v60 = vsel %vm755_vm12, %v2386_v48, 0.0  ;;  %vm887_vm14 = vcmp.eq.s32.totalorder %v2304_v1, %v2390_v52 }
  0x82   : > { %v921_v61 = vsel %vm855_vm13, %v2388_v50, 0.0  ;;  %vm1051_vm15 = vcmp.eq.s32.totalorder %v2301_v11, %v2398_v57  ;;  %v2411_v10 = vperm.slane %v1762_v53, 0  ;;  %v953_v5 = vsel %vm887_vm14, %v2388_v50, 0.0 }
  0x83   : > { %v985_v6 = vadd.f32 %v921_v61, %v789_v59  ;;  %v1117_v7 = vsel %vm1051_vm15, %v2392_v58, 0.0  ;;  %v1017_v14 = vadd.f32 %v953_v5, %v821_v60  ;;  %vm1083_vm0 = vcmp.eq.s32.totalorder %v2304_v1, %v2398_v57 }
  0x84   : > { %vm1247_vm1 = vcmp.eq.s32.totalorder %v2301_v11, %v2411_v10  ;;  %v1149_v17 = vsel %vm1083_vm0, %v2392_v58, 0.0  ;;  %vm1279_vm2 = vcmp.eq.s32.totalorder %v2304_v1, %v2411_v10  ;;  %vm721_vm3 = vcmp.eq.s32.totalorder %v2307_v13, %v2384_v47 }
  0x85   : > { %v1181_v18 = vadd.f32 %v1117_v7, %v985_v6  ;;  %v1313_v20 = vsel %vm1247_vm1, %v2394_v49, 0.0  ;;  %v1213_v22 = vadd.f32 %v1149_v17, %v1017_v14  ;;  %v1345_v23 = vsel %vm1279_vm2, %v2394_v49, 0.0 }
  0x86   : > { %v787_v25 = vsel %vm721_vm3, %v2386_v48, 0.0  ;;  %vm853_vm5 = vcmp.eq.s32.totalorder %v2307_v13, %v2390_v52  ;;  %vm1049_vm4 = vcmp.eq.s32.totalorder %v2307_v13, %v2398_v57  ;;  %vm1245_vm6 = vcmp.eq.s32.totalorder %v2307_v13, %v2411_v10 }
  0x87   : > { %v1377_v26 = vadd.f32 %v1313_v20, %v1181_v18  ;;  %v1409_v29 = vadd.f32 %v1345_v23, %v1213_v22  ;;  %v919_v27 = vsel %vm853_vm5, %v2388_v50, 0.0  ;;  %v1115_v31 = vsel %vm1049_vm4, %v2392_v58, 0.0 }
  0x88   : > { %v983_v33 = vadd.f32 %v919_v27, %v787_v25  ;;  %v1311_v34 = vsel %vm1245_vm6, %v2394_v49, 0.0  ;;  %vm753_vm7 = vcmp.eq.s32.totalorder %v2331_v38, %v2384_v47  ;;  %vm885_vm8 = vcmp.eq.s32.totalorder %v2331_v38, %v2390_v52 }
  0x89   : > { %1457 = vmatpush.msra.mxu2 %v1377_v26  ;;  %1477 = vmatpush.msra.mxu3 %v1409_v29  ;;  %v819_v35 = vsel %vm753_vm7, %v2386_v48, 0.0  ;;  %v951_v37 = vsel %vm885_vm8, %v2388_v50, 0.0  ;;  %vm1081_vm9 = vcmp.eq.s32.totalorder %v2331_v38, %v2398_v57  ;;  %vm1277_vm10 = vcmp.eq.s32.totalorder %v2331_v38, %v2411_v10 }
  0x8a   : > { %v1179_v39 = vadd.f32 %v1115_v31, %v983_v33  ;;  %v1015_v40 = vadd.f32 %v951_v37, %v819_v35  ;;  %v1147_v41 = vsel %vm1081_vm9, %v2392_v58, 0.0  ;;  %v1343_v42 = vsel %vm1277_vm10, %v2394_v49, 0.0 }
  0x8b   : > { %vm719_vm11 = vcmp.eq.s32.totalorder %v2338_v43, %v2384_v47  ;;  %vm851_vm12 = vcmp.eq.s32.totalorder %v2338_v43, %v2390_v52  ;;  %vm1047_vm13 = vcmp.eq.s32.totalorder %v2338_v43, %v2398_v57  ;;  %vm1243_vm14 = vcmp.eq.s32.totalorder %v2338_v43, %v2411_v10 }
  0x8c   : > { %v1375_v45 = vadd.f32 %v1311_v34, %v1179_v39  ;;  %v1211_v46 = vadd.f32 %v1147_v41, %v1015_v40  ;;  %v785_v51 = vsel %vm719_vm11, %v2386_v48, 0.0  ;;  %v917_v53 = vsel %vm851_vm12, %v2388_v50, 0.0 }
  0x8d   : > { %v981_v59 = vadd.f32 %v917_v53, %v785_v51  ;;  %v1113_v60 = vsel %vm1047_vm13, %v2392_v58, 0.0  ;;  %v1309_v61 = vsel %vm1243_vm14, %v2394_v49, 0.0  ;;  %vm751_vm15 = vcmp.eq.s32.totalorder %v2355_v54, %v2384_v47 }
  0x8e   : > { %1458 = vmatpush.msra.mxu2 %v1375_v45  ;;  %v1407_v5 = vadd.f32 %v1343_v42, %v1211_v46  ;;  %v817_v6 = vsel %vm751_vm15, %v2386_v48, 0.0  ;;  %vm883_vm0 = vcmp.eq.s32.totalorder %v2355_v54, %v2390_v52  ;;  %vm1079_vm1 = vcmp.eq.s32.totalorder %v2355_v54, %v2398_v57 }
  0x8f   : > { %v1177_v7 = vadd.f32 %v1113_v60, %v981_v59  ;;  %v949_v14 = vsel %vm883_vm0, %v2388_v50, 0.0  ;;  %v1145_v17 = vsel %vm1079_vm1, %v2392_v58, 0.0  ;;  %vm1275_vm2 = vcmp.eq.s32.totalorder %v2355_v54, %v2411_v10 }
  0x90   : > { %1478 = vmatpush.msra.mxu3 %v1407_v5  ;;  %v1013_v18 = vadd.f32 %v949_v14, %v817_v6  ;;  %v1341_v20 = vsel %vm1275_vm2, %v2394_v49, 0.0  ;;  %vm717_vm3 = vcmp.eq.s32.totalorder %v2358_v55, %v2384_v47  ;;  %vm849_vm5 = vcmp.eq.s32.totalorder %v2358_v55, %v2390_v52 }
  0x91   : > { %v1373_v22 = vadd.f32 %v1309_v61, %v1177_v7  ;;  %v783_v23 = vsel %vm717_vm3, %v2386_v48, 0.0  ;;  %v915_v25 = vsel %vm849_vm5, %v2388_v50, 0.0  ;;  %vm1045_vm4 = vcmp.eq.s32.totalorder %v2358_v55, %v2398_v57 }
  0x92   : > { %v1209_v26 = vadd.f32 %v1145_v17, %v1013_v18  ;;  %v979_v29 = vadd.f32 %v915_v25, %v783_v23  ;;  %v1111_v27 = vsel %vm1045_vm4, %v2392_v58, 0.0  ;;  %vm1241_vm6 = vcmp.eq.s32.totalorder %v2358_v55, %v2411_v10 }
  0x93   : > { %1459 = vmatpush.msra.mxu2 %v1373_v22  ;;  %v1307_v31 = vsel %vm1241_vm6, %v2394_v49, 0.0  ;;  %vm749_vm7 = vcmp.eq.s32.totalorder %v2367_v63, %v2384_v47  ;;  %vm881_vm8 = vcmp.eq.s32.totalorder %v2367_v63, %v2390_v52  ;;  %vm1077_vm9 = vcmp.eq.s32.totalorder %v2367_v63, %v2398_v57 }
  0x94   : > { %v1405_v33 = vadd.f32 %v1341_v20, %v1209_v26  ;;  %v1175_v34 = vadd.f32 %v1111_v27, %v979_v29  ;;  %v815_v35 = vsel %vm749_vm7, %v2386_v48, 0.0  ;;  %v947_v37 = vsel %vm881_vm8, %v2388_v50, 0.0 }
  0x95   : > { %v1011_v39 = vadd.f32 %v947_v37, %v815_v35  ;;  %v1143_v40 = vsel %vm1077_vm9, %v2392_v58, 0.0  ;;  %vm1273_vm10 = vcmp.eq.s32.totalorder %v2367_v63, %v2411_v10  ;;  %v547_v41 = vsub.f32 %v2360_v56, %v2372_v3 }
  0x96   : > { %1479 = vmatpush.msra.mxu3 %v1405_v33  ;;  %v1371_v42 = vadd.f32 %v1307_v31, %v1175_v34  ;;  %v1339_v45 = vsel %vm1273_vm10, %v2394_v49, 0.0  ;;  %v549_v46 = vsub.f32 1.0, %v2381_v16  ;;  %vm553_vm11 = vcmp.ge.f32.partialorder %v2369_v2, 0.0 }
  0x97   : > { %v1207_v51 = vadd.f32 %v1143_v40, %v1011_v39  ;;  %v551_v53 = vsub.f32 1.0, %v547_v41  ;;  %vm555_vm12 = vcmp.le.f32.partialorder %v2369_v2, 15.0  ;;  %vm559_vm13 = vcmp.ge.f32.partialorder %v2375_v8, 0.0 }
  0x98   : > { %1460 = vmatpush.msra.mxu2 %v1371_v42  ;;  %vm2502_vm14 = vmand %vm553_vm11, %vm555_vm12  ;;  %vm561_vm15 = vcmp.le.f32.partialorder %v2375_v8, 15.0  ;;  %vm565_vm0 = vcmp.ge.f32.partialorder %v2372_v3, 0.0  ;;  %vm567_vm1 = vcmp.le.f32.partialorder %v2372_v3, 15.0  ;;  %vm571_vm2 = vcmp.ge.f32.partialorder %v2378_v15, 0.0 }
  0x99   : > { %v1403_v56 = vadd.f32 %v1339_v45, %v1207_v51  ;;  %vm2510_vm3 = vmand %vm559_vm13, %vm561_vm15  ;;  %vm573_vm5 = vcmp.le.f32.partialorder %v2378_v15, 15.0  ;;  %v579_v61 = vmul.f32 %v551_v53, %v549_v46  ;;  %v585_v5 = vmul.f32 %v551_v53, %v2381_v16 }
  0x9a   : > { %vm2516_vm4 = vmand %vm565_vm0, %vm567_vm1  ;;  %v591_v7 = vmul.f32 %v549_v46, %v547_v41  ;;  %v597_v14 = vmul.f32 %v547_v41, %v2381_v16  ;;  %v621_v17 = vmax.f32 %v2369_v2, 0.0  ;;  %v625_v18 = vmax.f32 %v2375_v8, 0.0 }
  0x9b   : > { %1480 = vmatpush.msra.mxu3 %v1403_v56  ;;  %vm2523_vm6 = vmand %vm571_vm2, %vm573_vm5  ;;  %v629_v22 = vmax.f32 %v2372_v3, 0.0  ;;  %v633_v23 = vmax.f32 %v2378_v15, 0.0  ;;  %v2530_v25 = vadd.s32 88, %v2292_v62  ;;  %v2537_v8 = vadd.s32 216, %v2292_v62 }
  0x9c   : > { %vm577_vm7 = vmand %vm2516_vm4, %vm2502_vm14  ;;  %v623_v2 = vmin.f32 %v621_v17, 15.0  ;;  %v627_v16 = vmin.f32 %v625_v18, 15.0  ;;  %v2540_v26 = vadd.s32 80, %v2292_v62  ;;  %v2565_v41 = vadd.s32 208, %v2292_v62 }
  0x9d   : > { %v581_v29 = vsel %vm577_vm7, %v579_v61, 0.0  ;;  %vm583_vm8 = vmand %vm2516_vm4, %vm2510_vm3  ;;  %v631_v3 = vmin.f32 %v629_v22, 15.0  ;;  %v635_v15 = vmin.f32 %v633_v23, 15.0  ;;  %vm715_vm9 = vcmp.eq.s32.totalorder %v2530_v25, %v2384_v47 }
  0x9e   : > { %v587_v27 = vsel %vm583_vm8, %v585_v5, 0.0  ;;  %vm589_vm10 = vmand %vm2523_vm6, %vm2502_vm14  ;;  %v781_v31 = vsel %vm715_vm9, %v2386_v48, 0.0  ;;  %vm847_vm11 = vcmp.eq.s32.totalorder %v2530_v25, %v2390_v52  ;;  %vm1043_vm12 = vcmp.eq.s32.totalorder %v2530_v25, %v2398_v57 }
  0x9f   : > { %v593_v33 = vsel %vm589_vm10, %v591_v7, 0.0  ;;  %vm595_vm13 = vmand %vm2523_vm6, %vm2510_vm3  ;;  %v601_v34 = vadd.f32 %v587_v27, %v581_v29  ;;  %v637_v35 = vmul.f32 16.0, %v631_v3  ;;  %v647_v37 = vmul.f32 16.0, %v635_v15 }
  0xa0   : > { %v599_v39 = vsel %vm595_vm13, %v597_v14, 0.0  ;;  %v913_v40 = vsel %vm847_vm11, %v2388_v50, 0.0  ;;  %vm1239_vm14 = vcmp.eq.s32.totalorder %v2530_v25, %v2411_v10  ;;  %v1109_v56 = vsel %vm1043_vm12, %v2392_v58, 0.0 }
  0xa1   : > { %v603_v42 = vadd.f32 %v601_v34, %v593_v33  ;;  %v639_v45 = vadd.f32 %v637_v35, %v623_v2  ;;  %v643_v46 = vadd.f32 %v637_v35, %v627_v16  ;;  %v649_v51 = vadd.f32 %v647_v37, %v623_v2 }
  0xa2   : > { %v653_v53 = vadd.f32 %v647_v37, %v627_v16  ;;  %v977_v59 = vadd.f32 %v913_v40, %v781_v31  ;;  %v1305_v60 = vsel %vm1239_vm14, %v2394_v49, 0.0  ;;  %vm747_vm5 = vcmp.eq.s32.totalorder %v2537_v8, %v2384_v47 }
  0xa3   : > { %v605_v61 = vadd.f32 %v603_v42, %v599_v39  ;;  %vm1723_vm15 = vcmp.lt.s32.totalorder %v639_v45, 0  ;;  %v1724_v5 = vceil.f32 %v639_v45  ;;  %v1725_v6 = vfloor.f32 %v639_v45 }
  0xa4   : > { %vm1733_vm0 = vcmp.lt.s32.totalorder %v643_v46, 0  ;;  %v1734_v7 = vceil.f32 %v643_v46  ;;  %v1735_v14 = vfloor.f32 %v643_v46  ;;  %vm1743_vm1 = vcmp.lt.s32.totalorder %v649_v51, 0 }
  0xa5   : > { %vm607_vm2 = vcmp.ge.f32.partialorder %v605_v61, 0.99999  ;;  %v1726_v17 = vsel %vm1723_vm15, %v1724_v5, %v1725_v6  ;;  %v1744_v18 = vceil.f32 %v649_v51  ;;  %v1745_v20 = vfloor.f32 %v649_v51 }
  0xa6   : > { %v1712_v22 = vsel %vm607_vm2, 1.0, %v2024_v4  ;;  %v1727_v23 = vcvt.f32.s32 %v1726_v17  ;;  %v1736_v2 = vsel %vm1733_vm0, %v1734_v7, %v1735_v14  ;;  %vm1753_vm3 = vcmp.lt.s32.totalorder %v653_v53, 0 }
  0xa7   : > { %v613_v16 = vmul.f32 %v1712_v22, %v581_v29  ;;  %v615_v3 = vmul.f32 %v1712_v22, %v587_v27  ;;  %v617_v15 = vmul.f32 %v1712_v22, %v593_v33  ;;  %v619_v31 = vmul.f32 %v1712_v22, %v599_v39 }
  0xa8   : > { %v1737_v34 = vcvt.f32.s32 %v1736_v2  ;;  %v1746_v35 = vsel %vm1743_vm1, %v1744_v18, %v1745_v20  ;;  %v1754_v37 = vceil.f32 %v653_v53  ;;  %v1755_v40 = vfloor.f32 %v653_v53 }
  0xa9   : > { %v1747_v42 = vcvt.f32.s32 %v1746_v35  ;;  %v2575_v45 = vperm.slane %v1727_v23, 0  ;;  %v2577_v46 = vperm.slane %v613_v16, 0  ;;  %v2579_v4 = vperm.slane %v615_v3, 0 }
  0xaa   : > { %v1756_v51 = vsel %vm1753_vm3, %v1754_v37, %v1755_v40  ;;  %v2581_v61 = vperm.slane %v1737_v34, 0  ;;  %v2583_v5 = vperm.slane %v617_v15, 0  ;;  %v2585_v29 = vperm.slane %v619_v31, 0 }
  0xab   : > { %v1757_v27 = vcvt.f32.s32 %v1756_v51  ;;  %vm722_vm4 = vcmp.eq.s32.totalorder %v2301_v11, %v2575_v45  ;;  %v2589_v33 = vperm.slane %v1747_v42, 0  ;;  %vm754_vm6 = vcmp.eq.s32.totalorder %v2304_v1, %v2575_v45 }
  0xac   : > { %v788_v39 = vsel %vm722_vm4, %v2577_v46, 0.0  ;;  %vm854_vm7 = vcmp.eq.s32.totalorder %v2301_v11, %v2581_v61  ;;  %v820_v53 = vsel %vm754_vm6, %v2577_v46, 0.0  ;;  %vm886_vm8 = vcmp.eq.s32.totalorder %v2304_v1, %v2581_v61 }
  0xad   : > { %v920_v6 = vsel %vm854_vm7, %v2579_v4, 0.0  ;;  %vm1050_vm9 = vcmp.eq.s32.totalorder %v2301_v11, %v2589_v33  ;;  %v2602_v7 = vperm.slane %v1757_v27, 0  ;;  %v952_v14 = vsel %vm886_vm8, %v2579_v4, 0.0 }
  0xae   : > { %v984_v17 = vadd.f32 %v920_v6, %v788_v39  ;;  %v1116_v18 = vsel %vm1050_vm9, %v2583_v5, 0.0  ;;  %v1016_v20 = vadd.f32 %v952_v14, %v820_v53  ;;  %vm1082_vm10 = vcmp.eq.s32.totalorder %v2304_v1, %v2589_v33 }
  0xaf   : > { %vm1246_vm11 = vcmp.eq.s32.totalorder %v2301_v11, %v2602_v7  ;;  %v1148_v22 = vsel %vm1082_vm10, %v2583_v5, 0.0  ;;  %vm1278_vm12 = vcmp.eq.s32.totalorder %v2304_v1, %v2602_v7  ;;  %v1173_v23 = vadd.f32 %v1109_v56, %v977_v59 }
  0xb0   : > { %v1180_v2 = vadd.f32 %v1116_v18, %v984_v17  ;;  %v1312_v16 = vsel %vm1246_vm11, %v2585_v29, 0.0  ;;  %v1212_v3 = vadd.f32 %v1148_v22, %v1016_v20  ;;  %v1344_v15 = vsel %vm1278_vm12, %v2585_v29, 0.0 }
  0xb1   : > { %v1369_v31 = vadd.f32 %v1305_v60, %v1173_v23  ;;  %v813_v34 = vsel %vm747_vm5, %v2386_v48, 0.0  ;;  %vm879_vm13 = vcmp.eq.s32.totalorder %v2537_v8, %v2390_v52  ;;  %vm1075_vm14 = vcmp.eq.s32.totalorder %v2537_v8, %v2398_v57 }
  0xb2   : > { %v1376_v11 = vadd.f32 %v1312_v16, %v1180_v2  ;;  %v1408_v1 = vadd.f32 %v1344_v15, %v1212_v3  ;;  %v945_v59 = vsel %vm879_vm13, %v2388_v50, 0.0  ;;  %v1141_v56 = vsel %vm1075_vm14, %v2392_v58, 0.0 }
  0xb3   : > { %1461 = vmatpush.msra.mxu2 %v1369_v31  ;;  %v1009_v35 = vadd.f32 %v945_v59, %v813_v34  ;;  %vm1271_vm15 = vcmp.eq.s32.totalorder %v2537_v8, %v2411_v10  ;;  %vm720_vm0 = vcmp.eq.s32.totalorder %v2307_v13, %v2575_v45  ;;  %vm852_vm1 = vcmp.eq.s32.totalorder %v2307_v13, %v2581_v61 }
  0xb4   : > { %1417 = vmatpush.msra.mxu0 %v1376_v11  ;;  %1437 = vmatpush.msra.mxu1 %v1408_v1  ;;  %v1337_v60 = vsel %vm1271_vm15, %v2394_v49, 0.0  ;;  %v786_v37 = vsel %vm720_vm0, %v2577_v46, 0.0  ;;  %v918_v40 = vsel %vm852_vm1, %v2579_v4, 0.0  ;;  %vm1048_vm2 = vcmp.eq.s32.totalorder %v2307_v13, %v2589_v33 }
  0xb5   : > { %v1205_v42 = vadd.f32 %v1141_v56, %v1009_v35  ;;  %v982_v51 = vadd.f32 %v918_v40, %v786_v37  ;;  %v1114_v27 = vsel %vm1048_vm2, %v2583_v5, 0.0  ;;  %vm1244_vm3 = vcmp.eq.s32.totalorder %v2307_v13, %v2602_v7 }
  0xb6   : > { %v1310_v39 = vsel %vm1244_vm3, %v2585_v29, 0.0  ;;  %vm752_vm5 = vcmp.eq.s32.totalorder %v2331_v38, %v2575_v45  ;;  %vm884_vm4 = vcmp.eq.s32.totalorder %v2331_v38, %v2581_v61  ;;  %vm1080_vm6 = vcmp.eq.s32.totalorder %v2331_v38, %v2589_v33 }
  0xb7   : > { %v1401_v53 = vadd.f32 %v1337_v60, %v1205_v42  ;;  %v1178_v6 = vadd.f32 %v1114_v27, %v982_v51  ;;  %v818_v14 = vsel %vm752_vm5, %v2577_v46, 0.0  ;;  %v950_v17 = vsel %vm884_vm4, %v2579_v4, 0.0 }
  0xb8   : > { %v1014_v18 = vadd.f32 %v950_v17, %v818_v14  ;;  %v1146_v13 = vsel %vm1080_vm6, %v2583_v5, 0.0  ;;  %vm1276_vm7 = vcmp.eq.s32.totalorder %v2331_v38, %v2602_v7  ;;  %vm713_vm8 = vcmp.eq.s32.totalorder %v2540_v26, %v2384_v47 }
  0xb9   : > { %1481 = vmatpush.msra.mxu3 %v1401_v53  ;;  %v1374_v20 = vadd.f32 %v1310_v39, %v1178_v6  ;;  %v1342_v22 = vsel %vm1276_vm7, %v2585_v29, 0.0  ;;  %v779_v23 = vsel %vm713_vm8, %v2386_v48, 0.0  ;;  %vm845_vm9 = vcmp.eq.s32.totalorder %v2540_v26, %v2390_v52 }
  0xba   : > { %v1210_v2 = vadd.f32 %v1146_v13, %v1014_v18  ;;  %v911_v16 = vsel %vm845_vm9, %v2388_v50, 0.0  ;;  %vm1041_vm10 = vcmp.eq.s32.totalorder %v2540_v26, %v2398_v57  ;;  %vm1237_vm11 = vcmp.eq.s32.totalorder %v2540_v26, %v2411_v10 }
  0xbb   : > { %1418 = vmatpush.msra.mxu0 %v1374_v20  ;;  %v975_v38 = vadd.f32 %v911_v16, %v779_v23  ;;  %v1107_v3 = vsel %vm1041_vm10, %v2392_v58, 0.0  ;;  %v1303_v15 = vsel %vm1237_vm11, %v2394_v49, 0.0  ;;  %vm745_vm12 = vcmp.eq.s32.totalorder %v2565_v41, %v2384_v47 }
  0xbc   : > { %v1406_v31 = vadd.f32 %v1342_v22, %v1210_v2  ;;  %v811_v34 = vsel %vm745_vm12, %v2386_v48, 0.0  ;;  %vm877_vm13 = vcmp.eq.s32.totalorder %v2565_v41, %v2390_v52  ;;  %vm1073_vm14 = vcmp.eq.s32.totalorder %v2565_v41, %v2398_v57 }
  0xbd   : > { %v1171_v11 = vadd.f32 %v1107_v3, %v975_v38  ;;  %v943_v1 = vsel %vm877_vm13, %v2388_v50, 0.0  ;;  %v1139_v59 = vsel %vm1073_vm14, %v2392_v58, 0.0  ;;  %vm1269_vm15 = vcmp.eq.s32.totalorder %v2565_v41, %v2411_v10 }
  0xbe   : > { %1438 = vmatpush.msra.mxu1 %v1406_v31  ;;  %v1007_v56 = vadd.f32 %v943_v1, %v811_v34  ;;  %v1335_v35 = vsel %vm1269_vm15, %v2394_v49, 0.0  ;;  %vm718_vm0 = vcmp.eq.s32.totalorder %v2338_v43, %v2575_v45  ;;  %vm850_vm1 = vcmp.eq.s32.totalorder %v2338_v43, %v2581_v61 }
  0xbf   : > { %v1367_v60 = vadd.f32 %v1303_v15, %v1171_v11  ;;  %v784_v37 = vsel %vm718_vm0, %v2577_v46, 0.0  ;;  %v916_v40 = vsel %vm850_vm1, %v2579_v4, 0.0  ;;  %vm1046_vm2 = vcmp.eq.s32.totalorder %v2338_v43, %v2589_v33 }
  0xc0   : > { %v1203_v42 = vadd.f32 %v1139_v59, %v1007_v56  ;;  %v980_v51 = vadd.f32 %v916_v40, %v784_v37  ;;  %v1112_v27 = vsel %vm1046_vm2, %v2583_v5, 0.0  ;;  %vm1242_vm3 = vcmp.eq.s32.totalorder %v2338_v43, %v2602_v7 }
  0xc1   : > { %1462 = vmatpush.msra.mxu2 %v1367_v60  ;;  %v1308_v39 = vsel %vm1242_vm3, %v2585_v29, 0.0  ;;  %vm750_vm5 = vcmp.eq.s32.totalorder %v2355_v54, %v2575_v45  ;;  %vm882_vm4 = vcmp.eq.s32.totalorder %v2355_v54, %v2581_v61  ;;  %vm1078_vm6 = vcmp.eq.s32.totalorder %v2355_v54, %v2589_v33 }
  0xc2   : > { %v1399_v53 = vadd.f32 %v1335_v35, %v1203_v42  ;;  %v1176_v6 = vadd.f32 %v1112_v27, %v980_v51  ;;  %v816_v14 = vsel %vm750_vm5, %v2577_v46, 0.0  ;;  %v948_v17 = vsel %vm882_vm4, %v2579_v4, 0.0 }
  0xc3   : > { %v1012_v18 = vadd.f32 %v948_v17, %v816_v14  ;;  %v1144_v43 = vsel %vm1078_vm6, %v2583_v5, 0.0  ;;  %vm1274_vm7 = vcmp.eq.s32.totalorder %v2355_v54, %v2602_v7  ;;  %v2700_v13 = vadd.s32 72, %v2292_v62 }
  0xc4   : > { %1482 = vmatpush.msra.mxu3 %v1399_v53  ;;  %v1372_v20 = vadd.f32 %v1308_v39, %v1176_v6  ;;  %v1340_v22 = vsel %vm1274_vm7, %v2585_v29, 0.0  ;;  %v2704_v23 = vadd.s32 200, %v2292_v62  ;;  %vm716_vm8 = vcmp.eq.s32.totalorder %v2358_v55, %v2575_v45 }
  0xc5   : > { %v1208_v2 = vadd.f32 %v1144_v43, %v1012_v18  ;;  %vm711_vm9 = vcmp.eq.s32.totalorder %v2700_v13, %v2384_v47  ;;  %vm843_vm10 = vcmp.eq.s32.totalorder %v2700_v13, %v2390_v52  ;;  %vm1039_vm11 = vcmp.eq.s32.totalorder %v2700_v13, %v2398_v57 }
  0xc6   : > { %1419 = vmatpush.msra.mxu0 %v1372_v20  ;;  %v777_v54 = vsel %vm711_vm9, %v2386_v48, 0.0  ;;  %v909_v16 = vsel %vm843_vm10, %v2388_v50, 0.0  ;;  %v1105_v38 = vsel %vm1039_vm11, %v2392_v58, 0.0  ;;  %vm1235_vm12 = vcmp.eq.s32.totalorder %v2700_v13, %v2411_v10 }
  0xc7   : > { %v1404_v3 = vadd.f32 %v1340_v22, %v1208_v2  ;;  %v973_v15 = vadd.f32 %v909_v16, %v777_v54  ;;  %v1301_v31 = vsel %vm1235_vm12, %v2394_v49, 0.0  ;;  %vm743_vm13 = vcmp.eq.s32.totalorder %v2704_v23, %v2384_v47 }
  0xc8   : > { %v809_v34 = vsel %vm743_vm13, %v2386_v48, 0.0  ;;  %vm875_vm14 = vcmp.eq.s32.totalorder %v2704_v23, %v2390_v52  ;;  %vm1071_vm15 = vcmp.eq.s32.totalorder %v2704_v23, %v2398_v57  ;;  %vm1267_vm0 = vcmp.eq.s32.totalorder %v2704_v23, %v2411_v10 }
  0xc9   : > { %1439 = vmatpush.msra.mxu1 %v1404_v3  ;;  %v1169_v11 = vadd.f32 %v1105_v38, %v973_v15  ;;  %v941_v1 = vsel %vm875_vm14, %v2388_v50, 0.0  ;;  %v1137_v59 = vsel %vm1071_vm15, %v2392_v58, 0.0  ;;  %v1333_v56 = vsel %vm1267_vm0, %v2394_v49, 0.0 }
  0xca   : > { %v1005_v35 = vadd.f32 %v941_v1, %v809_v34  ;;  %v782_v60 = vsel %vm716_vm8, %v2577_v46, 0.0  ;;  %vm848_vm1 = vcmp.eq.s32.totalorder %v2358_v55, %v2581_v61  ;;  %vm1044_vm2 = vcmp.eq.s32.totalorder %v2358_v55, %v2589_v33 }
  0xcb   : > { %v1365_v37 = vadd.f32 %v1301_v31, %v1169_v11  ;;  %v914_v40 = vsel %vm848_vm1, %v2579_v4, 0.0  ;;  %v1110_v42 = vsel %vm1044_vm2, %v2583_v5, 0.0  ;;  %vm1240_vm3 = vcmp.eq.s32.totalorder %v2358_v55, %v2602_v7 }
  0xcc   : > { %v1201_v51 = vadd.f32 %v1137_v59, %v1005_v35  ;;  %v978_v27 = vadd.f32 %v914_v40, %v782_v60  ;;  %v1306_v39 = vsel %vm1240_vm3, %v2585_v29, 0.0  ;;  %vm748_vm5 = vcmp.eq.s32.totalorder %v2367_v63, %v2575_v45 }
  0xcd   : > { %1463 = vmatpush.msra.mxu2 %v1365_v37  ;;  %v814_v53 = vsel %vm748_vm5, %v2577_v46, 0.0  ;;  %vm880_vm4 = vcmp.eq.s32.totalorder %v2367_v63, %v2581_v61  ;;  %vm1076_vm6 = vcmp.eq.s32.totalorder %v2367_v63, %v2589_v33  ;;  %vm1272_vm7 = vcmp.eq.s32.totalorder %v2367_v63, %v2602_v7 }
  0xce   : > { %v1397_v55 = vadd.f32 %v1333_v56, %v1201_v51  ;;  %v1174_v6 = vadd.f32 %v1110_v42, %v978_v27  ;;  %v946_v14 = vsel %vm880_vm4, %v2579_v4, 0.0  ;;  %v1142_v17 = vsel %vm1076_vm6, %v2583_v5, 0.0 }
  0xcf   : > { %v1010_v18 = vadd.f32 %v946_v14, %v814_v53  ;;  %v1338_v43 = vsel %vm1272_vm7, %v2585_v29, 0.0  ;;  %v2758_v20 = vadd.s32 64, %v2292_v62  ;;  %v2761_v22 = vadd.s32 192, %v2292_v62 }
  0xd0   : > { %1483 = vmatpush.msra.mxu3 %v1397_v55  ;;  %v1370_v2 = vadd.f32 %v1306_v39, %v1174_v6  ;;  %vm714_vm8 = vcmp.eq.s32.totalorder %v2530_v25, %v2575_v45  ;;  %vm846_vm9 = vcmp.eq.s32.totalorder %v2530_v25, %v2581_v61  ;;  %vm1042_vm10 = vcmp.eq.s32.totalorder %v2530_v25, %v2589_v33 }
  0xd1   : > { %v1206_v63 = vadd.f32 %v1142_v17, %v1010_v18  ;;  %vm709_vm11 = vcmp.eq.s32.totalorder %v2758_v20, %v2384_v47  ;;  %vm841_vm12 = vcmp.eq.s32.totalorder %v2758_v20, %v2390_v52  ;;  %vm1037_vm13 = vcmp.eq.s32.totalorder %v2758_v20, %v2398_v57 }
  0xd2   : > { %1420 = vmatpush.msra.mxu0 %v1370_v2  ;;  %v775_v54 = vsel %vm709_vm11, %v2386_v48, 0.0  ;;  %v907_v16 = vsel %vm841_vm12, %v2388_v50, 0.0  ;;  %v1103_v38 = vsel %vm1037_vm13, %v2392_v58, 0.0  ;;  %vm1233_vm14 = vcmp.eq.s32.totalorder %v2758_v20, %v2411_v10 }
  0xd3   : > { %v1402_v3 = vadd.f32 %v1338_v43, %v1206_v63  ;;  %v971_v15 = vadd.f32 %v907_v16, %v775_v54  ;;  %v1299_v31 = vsel %vm1233_vm14, %v2394_v49, 0.0  ;;  %vm741_vm15 = vcmp.eq.s32.totalorder %v2761_v22, %v2384_v47 }
  0xd4   : > { %v807_v34 = vsel %vm741_vm15, %v2386_v48, 0.0  ;;  %vm873_vm0 = vcmp.eq.s32.totalorder %v2761_v22, %v2390_v52  ;;  %vm1069_vm1 = vcmp.eq.s32.totalorder %v2761_v22, %v2398_v57  ;;  %vm1265_vm2 = vcmp.eq.s32.totalorder %v2761_v22, %v2411_v10 }
  0xd5   : > { %1440 = vmatpush.msra.mxu1 %v1402_v3  ;;  %v1167_v11 = vadd.f32 %v1103_v38, %v971_v15  ;;  %v939_v1 = vsel %vm873_vm0, %v2388_v50, 0.0  ;;  %v1135_v59 = vsel %vm1069_vm1, %v2392_v58, 0.0  ;;  %v1331_v56 = vsel %vm1265_vm2, %v2394_v49, 0.0 }
  0xd6   : > { %v1003_v35 = vadd.f32 %v939_v1, %v807_v34  ;;  %v780_v60 = vsel %vm714_vm8, %v2577_v46, 0.0  ;;  %v912_v37 = vsel %vm846_vm9, %v2579_v4, 0.0  ;;  %v1108_v40 = vsel %vm1042_vm10, %v2583_v5, 0.0 }
  0xd7   : > { %v1363_v42 = vadd.f32 %v1299_v31, %v1167_v11  ;;  %v976_v51 = vadd.f32 %v912_v37, %v780_v60  ;;  %vm1238_vm3 = vcmp.eq.s32.totalorder %v2530_v25, %v2602_v7  ;;  %vm746_vm5 = vcmp.eq.s32.totalorder %v2537_v8, %v2575_v45 }
  0xd8   : > { %v1199_v27 = vadd.f32 %v1135_v59, %v1003_v35  ;;  %v1304_v39 = vsel %vm1238_vm3, %v2585_v29, 0.0  ;;  %v812_v53 = vsel %vm746_vm5, %v2577_v46, 0.0  ;;  %vm878_vm4 = vcmp.eq.s32.totalorder %v2537_v8, %v2581_v61 }
  0xd9   : > { %1464 = vmatpush.msra.mxu2 %v1363_v42  ;;  %v1172_v55 = vadd.f32 %v1108_v40, %v976_v51  ;;  %v944_v6 = vsel %vm878_vm4, %v2579_v4, 0.0  ;;  %vm1074_vm6 = vcmp.eq.s32.totalorder %v2537_v8, %v2589_v33  ;;  %vm1270_vm7 = vcmp.eq.s32.totalorder %v2537_v8, %v2602_v7 }
  0xda   : > { %v1395_v25 = vadd.f32 %v1331_v56, %v1199_v27  ;;  %v1008_v14 = vadd.f32 %v944_v6, %v812_v53  ;;  %v1140_v17 = vsel %vm1074_vm6, %v2583_v5, 0.0  ;;  %v1336_v18 = vsel %vm1270_vm7, %v2585_v29, 0.0 }
  0xdb   : > { %v1368_v43 = vadd.f32 %v1304_v39, %v1172_v55  ;;  %v2821_v2 = vadd.s32 56, %v2292_v62  ;;  %v2824_v63 = vadd.s32 184, %v2292_v62  ;;  %vm712_vm8 = vcmp.eq.s32.totalorder %v2540_v26, %v2575_v45 }
  0xdc   : > { %1484 = vmatpush.msra.mxu3 %v1395_v25  ;;  %v1204_v54 = vadd.f32 %v1140_v17, %v1008_v14  ;;  %v778_v8 = vsel %vm712_vm8, %v2577_v46, 0.0  ;;  %vm844_vm9 = vcmp.eq.s32.totalorder %v2540_v26, %v2581_v61  ;;  %vm1040_vm10 = vcmp.eq.s32.totalorder %v2540_v26, %v2589_v33 }
  0xdd   : > { %1421 = vmatpush.msra.mxu0 %v1368_v43  ;;  %vm707_vm11 = vcmp.eq.s32.totalorder %v2821_v2, %v2384_v47  ;;  %vm839_vm12 = vcmp.eq.s32.totalorder %v2821_v2, %v2390_v52  ;;  %vm1035_vm13 = vcmp.eq.s32.totalorder %v2821_v2, %v2398_v57  ;;  %vm1231_vm14 = vcmp.eq.s32.totalorder %v2821_v2, %v2411_v10 }
  0xde   : > { %v1400_v16 = vadd.f32 %v1336_v18, %v1204_v54  ;;  %v773_v38 = vsel %vm707_vm11, %v2386_v48, 0.0  ;;  %v905_v3 = vsel %vm839_vm12, %v2388_v50, 0.0  ;;  %v1101_v15 = vsel %vm1035_vm13, %v2392_v58, 0.0 }
  0xdf   : > { %v969_v31 = vadd.f32 %v905_v3, %v773_v38  ;;  %v1297_v34 = vsel %vm1231_vm14, %v2394_v49, 0.0  ;;  %vm739_vm15 = vcmp.eq.s32.totalorder %v2824_v63, %v2384_v47  ;;  %vm871_vm0 = vcmp.eq.s32.totalorder %v2824_v63, %v2390_v52 }
  0xe0   : > { %1441 = vmatpush.msra.mxu1 %v1400_v16  ;;  %v805_v11 = vsel %vm739_vm15, %v2386_v48, 0.0  ;;  %v937_v1 = vsel %vm871_vm0, %v2388_v50, 0.0  ;;  %vm1067_vm1 = vcmp.eq.s32.totalorder %v2824_v63, %v2398_v57  ;;  %vm1263_vm2 = vcmp.eq.s32.totalorder %v2824_v63, %v2411_v10 }
  0xe1   : > { %v1165_v59 = vadd.f32 %v1101_v15, %v969_v31  ;;  %v1001_v56 = vadd.f32 %v937_v1, %v805_v11  ;;  %v1133_v35 = vsel %vm1067_vm1, %v2392_v58, 0.0  ;;  %v1329_v60 = vsel %vm1263_vm2, %v2394_v49, 0.0 }
  0xe2   : > { %v910_v37 = vsel %vm844_vm9, %v2579_v4, 0.0  ;;  %v1106_v40 = vsel %vm1040_vm10, %v2583_v5, 0.0  ;;  %vm1236_vm3 = vcmp.eq.s32.totalorder %v2540_v26, %v2602_v7  ;;  %vm744_vm5 = vcmp.eq.s32.totalorder %v2565_v41, %v2575_v45 }
  0xe3   : > { %v1361_v42 = vadd.f32 %v1297_v34, %v1165_v59  ;;  %v1197_v51 = vadd.f32 %v1133_v35, %v1001_v56  ;;  %v974_v27 = vadd.f32 %v910_v37, %v778_v8  ;;  %v1302_v39 = vsel %vm1236_vm3, %v2585_v29, 0.0 }
  0xe4   : > { %v810_v53 = vsel %vm744_vm5, %v2577_v46, 0.0  ;;  %vm876_vm4 = vcmp.eq.s32.totalorder %v2565_v41, %v2581_v61  ;;  %vm1072_vm6 = vcmp.eq.s32.totalorder %v2565_v41, %v2589_v33  ;;  %vm1268_vm7 = vcmp.eq.s32.totalorder %v2565_v41, %v2602_v7 }
  0xe5   : > { %1465 = vmatpush.msra.mxu2 %v1361_v42  ;;  %v1393_v26 = vadd.f32 %v1329_v60, %v1197_v51  ;;  %v1170_v55 = vadd.f32 %v1106_v40, %v974_v27  ;;  %v942_v6 = vsel %vm876_vm4, %v2579_v4, 0.0  ;;  %v1138_v25 = vsel %vm1072_vm6, %v2583_v5, 0.0 }
  0xe6   : > { %v1006_v14 = vadd.f32 %v942_v6, %v810_v53  ;;  %v1334_v17 = vsel %vm1268_vm7, %v2585_v29, 0.0  ;;  %v2881_v18 = vadd.s32 48, %v2292_v62  ;;  %v2884_v43 = vadd.s32 176, %v2292_v62 }
  0xe7   : > { %1485 = vmatpush.msra.mxu3 %v1393_v26  ;;  %v1366_v54 = vadd.f32 %v1302_v39, %v1170_v55  ;;  %vm710_vm8 = vcmp.eq.s32.totalorder %v2700_v13, %v2575_v45  ;;  %vm842_vm9 = vcmp.eq.s32.totalorder %v2700_v13, %v2581_v61  ;;  %vm1038_vm10 = vcmp.eq.s32.totalorder %v2700_v13, %v2589_v33 }
  0xe8   : > { %v1202_v41 = vadd.f32 %v1138_v25, %v1006_v14  ;;  %vm705_vm11 = vcmp.eq.s32.totalorder %v2881_v18, %v2384_v47  ;;  %vm837_vm12 = vcmp.eq.s32.totalorder %v2881_v18, %v2390_v52  ;;  %vm1033_vm13 = vcmp.eq.s32.totalorder %v2881_v18, %v2398_v57 }
  0xe9   : > { %1422 = vmatpush.msra.mxu0 %v1366_v54  ;;  %v771_v8 = vsel %vm705_vm11, %v2386_v48, 0.0  ;;  %v903_v16 = vsel %vm837_vm12, %v2388_v50, 0.0  ;;  %v1099_v38 = vsel %vm1033_vm13, %v2392_v58, 0.0  ;;  %vm1229_vm14 = vcmp.eq.s32.totalorder %v2881_v18, %v2411_v10 }
  0xea   : > { %v1398_v3 = vadd.f32 %v1334_v17, %v1202_v41  ;;  %v967_v15 = vadd.f32 %v903_v16, %v771_v8  ;;  %v1295_v31 = vsel %vm1229_vm14, %v2394_v49, 0.0  ;;  %vm737_vm15 = vcmp.eq.s32.totalorder %v2884_v43, %v2384_v47 }
  0xeb   : > { %v803_v34 = vsel %vm737_vm15, %v2386_v48, 0.0  ;;  %vm869_vm0 = vcmp.eq.s32.totalorder %v2884_v43, %v2390_v52  ;;  %vm1065_vm1 = vcmp.eq.s32.totalorder %v2884_v43, %v2398_v57  ;;  %vm1261_vm2 = vcmp.eq.s32.totalorder %v2884_v43, %v2411_v10 }
  0xec   : > { %1442 = vmatpush.msra.mxu1 %v1398_v3  ;;  %v1163_v11 = vadd.f32 %v1099_v38, %v967_v15  ;;  %v935_v1 = vsel %vm869_vm0, %v2388_v50, 0.0  ;;  %v1131_v59 = vsel %vm1065_vm1, %v2392_v58, 0.0  ;;  %v1327_v56 = vsel %vm1261_vm2, %v2394_v49, 0.0 }
  0xed   : > { %v999_v35 = vadd.f32 %v935_v1, %v803_v34  ;;  %v776_v60 = vsel %vm710_vm8, %v2577_v46, 0.0  ;;  %v908_v37 = vsel %vm842_vm9, %v2579_v4, 0.0  ;;  %v1104_v40 = vsel %vm1038_vm10, %v2583_v5, 0.0 }
  0xee   : > { %v1359_v42 = vadd.f32 %v1295_v31, %v1163_v11  ;;  %v972_v51 = vadd.f32 %v908_v37, %v776_v60  ;;  %vm1234_vm3 = vcmp.eq.s32.totalorder %v2700_v13, %v2602_v7  ;;  %vm742_vm5 = vcmp.eq.s32.totalorder %v2704_v23, %v2575_v45 }
  0xef   : > { %v1195_v27 = vadd.f32 %v1131_v59, %v999_v35  ;;  %v1300_v39 = vsel %vm1234_vm3, %v2585_v29, 0.0  ;;  %v808_v53 = vsel %vm742_vm5, %v2577_v46, 0.0  ;;  %vm874_vm4 = vcmp.eq.s32.totalorder %v2704_v23, %v2581_v61 }
  0xf0   : > { %1466 = vmatpush.msra.mxu2 %v1359_v42  ;;  %v1168_v26 = vadd.f32 %v1104_v40, %v972_v51  ;;  %v940_v55 = vsel %vm874_vm4, %v2579_v4, 0.0  ;;  %vm1070_vm6 = vcmp.eq.s32.totalorder %v2704_v23, %v2589_v33  ;;  %vm1266_vm7 = vcmp.eq.s32.totalorder %v2704_v23, %v2602_v7 }
  0xf1   : > { %v1391_v13 = vadd.f32 %v1327_v56, %v1195_v27  ;;  %v1004_v6 = vadd.f32 %v940_v55, %v808_v53  ;;  %v1136_v25 = vsel %vm1070_vm6, %v2583_v5, 0.0  ;;  %v1332_v14 = vsel %vm1266_vm7, %v2585_v29, 0.0 }
  0xf2   : > { %v1364_v17 = vadd.f32 %v1300_v39, %v1168_v26  ;;  %v2944_v54 = vadd.s32 40, %v2292_v62  ;;  %v2947_v41 = vadd.s32 168, %v2292_v62  ;;  %vm708_vm8 = vcmp.eq.s32.totalorder %v2758_v20, %v2575_v45 }
  0xf3   : > { %1486 = vmatpush.msra.mxu3 %v1391_v13  ;;  %v1200_v8 = vadd.f32 %v1136_v25, %v1004_v6  ;;  %v774_v23 = vsel %vm708_vm8, %v2577_v46, 0.0  ;;  %vm840_vm9 = vcmp.eq.s32.totalorder %v2758_v20, %v2581_v61  ;;  %vm1036_vm10 = vcmp.eq.s32.totalorder %v2758_v20, %v2589_v33 }
  0xf4   : > { %1423 = vmatpush.msra.mxu0 %v1364_v17  ;;  %vm703_vm11 = vcmp.eq.s32.totalorder %v2944_v54, %v2384_v47  ;;  %vm835_vm12 = vcmp.eq.s32.totalorder %v2944_v54, %v2390_v52  ;;  %vm1031_vm13 = vcmp.eq.s32.totalorder %v2944_v54, %v2398_v57  ;;  %vm1227_vm14 = vcmp.eq.s32.totalorder %v2944_v54, %v2411_v10 }
  0xf5   : > { %v1396_v16 = vadd.f32 %v1332_v14, %v1200_v8  ;;  %v769_v38 = vsel %vm703_vm11, %v2386_v48, 0.0  ;;  %v901_v3 = vsel %vm835_vm12, %v2388_v50, 0.0  ;;  %v1097_v15 = vsel %vm1031_vm13, %v2392_v58, 0.0 }
  0xf6   : > { %v965_v31 = vadd.f32 %v901_v3, %v769_v38  ;;  %v1293_v34 = vsel %vm1227_vm14, %v2394_v49, 0.0  ;;  %vm735_vm15 = vcmp.eq.s32.totalorder %v2947_v41, %v2384_v47  ;;  %vm867_vm0 = vcmp.eq.s32.totalorder %v2947_v41, %v2390_v52 }
  0xf7   : > { %1443 = vmatpush.msra.mxu1 %v1396_v16  ;;  %v801_v11 = vsel %vm735_vm15, %v2386_v48, 0.0  ;;  %v933_v1 = vsel %vm867_vm0, %v2388_v50, 0.0  ;;  %vm1063_vm1 = vcmp.eq.s32.totalorder %v2947_v41, %v2398_v57  ;;  %vm1259_vm2 = vcmp.eq.s32.totalorder %v2947_v41, %v2411_v10 }
  0xf8   : > { %v1161_v59 = vadd.f32 %v1097_v15, %v965_v31  ;;  %v997_v56 = vadd.f32 %v933_v1, %v801_v11  ;;  %v1129_v35 = vsel %vm1063_vm1, %v2392_v58, 0.0  ;;  %v1325_v60 = vsel %vm1259_vm2, %v2394_v49, 0.0 }
  0xf9   : > { %v906_v37 = vsel %vm840_vm9, %v2579_v4, 0.0  ;;  %v1102_v40 = vsel %vm1036_vm10, %v2583_v5, 0.0  ;;  %vm1232_vm3 = vcmp.eq.s32.totalorder %v2758_v20, %v2602_v7  ;;  %vm740_vm5 = vcmp.eq.s32.totalorder %v2761_v22, %v2575_v45 }
  0xfa   : > { %v1357_v42 = vadd.f32 %v1293_v34, %v1161_v59  ;;  %v1193_v51 = vadd.f32 %v1129_v35, %v997_v56  ;;  %v970_v27 = vadd.f32 %v906_v37, %v774_v23  ;;  %v1298_v39 = vsel %vm1232_vm3, %v2585_v29, 0.0 }
  0xfb   : > { %v806_v53 = vsel %vm740_vm5, %v2577_v46, 0.0  ;;  %vm872_vm4 = vcmp.eq.s32.totalorder %v2761_v22, %v2581_v61  ;;  %vm1068_vm6 = vcmp.eq.s32.totalorder %v2761_v22, %v2589_v33  ;;  %vm1264_vm7 = vcmp.eq.s32.totalorder %v2761_v22, %v2602_v7 }
  0xfc   : > { %1467 = vmatpush.msra.mxu2 %v1357_v42  ;;  %v1389_v20 = vadd.f32 %v1325_v60, %v1193_v51  ;;  %v1166_v26 = vadd.f32 %v1102_v40, %v970_v27  ;;  %v938_v55 = vsel %vm872_vm4, %v2579_v4, 0.0  ;;  %v1134_v13 = vsel %vm1068_vm6, %v2583_v5, 0.0 }
  0xfd   : > { %v1002_v6 = vadd.f32 %v938_v55, %v806_v53  ;;  %v1330_v25 = vsel %vm1264_vm7, %v2585_v29, 0.0  ;;  %v3004_v14 = vadd.s32 32, %v2292_v62  ;;  %v3007_v17 = vadd.s32 160, %v2292_v62 }
  0xfe   : > { %1487 = vmatpush.msra.mxu3 %v1389_v20  ;;  %v1362_v8 = vadd.f32 %v1298_v39, %v1166_v26  ;;  %vm706_vm8 = vcmp.eq.s32.totalorder %v2821_v2, %v2575_v45  ;;  %vm838_vm9 = vcmp.eq.s32.totalorder %v2821_v2, %v2581_v61  ;;  %vm1034_vm10 = vcmp.eq.s32.totalorder %v2821_v2, %v2589_v33 }
  0xff   : > { %v1198_v22 = vadd.f32 %v1134_v13, %v1002_v6  ;;  %vm701_vm11 = vcmp.eq.s32.totalorder %v3004_v14, %v2384_v47  ;;  %vm833_vm12 = vcmp.eq.s32.totalorder %v3004_v14, %v2390_v52  ;;  %vm1029_vm13 = vcmp.eq.s32.totalorder %v3004_v14, %v2398_v57 }
 0x100   : > { %1424 = vmatpush.msra.mxu0 %v1362_v8  ;;  %v767_v23 = vsel %vm701_vm11, %v2386_v48, 0.0  ;;  %v899_v16 = vsel %vm833_vm12, %v2388_v50, 0.0  ;;  %v1095_v38 = vsel %vm1029_vm13, %v2392_v58, 0.0  ;;  %vm1225_vm14 = vcmp.eq.s32.totalorder %v3004_v14, %v2411_v10 }
 0x101   : > { %v1394_v3 = vadd.f32 %v1330_v25, %v1198_v22  ;;  %v963_v15 = vadd.f32 %v899_v16, %v767_v23  ;;  %v1291_v31 = vsel %vm1225_vm14, %v2394_v49, 0.0  ;;  %vm733_vm15 = vcmp.eq.s32.totalorder %v3007_v17, %v2384_v47 }
 0x102   : > { %v799_v34 = vsel %vm733_vm15, %v2386_v48, 0.0  ;;  %vm865_vm0 = vcmp.eq.s32.totalorder %v3007_v17, %v2390_v52  ;;  %vm1061_vm1 = vcmp.eq.s32.totalorder %v3007_v17, %v2398_v57  ;;  %vm1257_vm2 = vcmp.eq.s32.totalorder %v3007_v17, %v2411_v10 }
 0x103   : > { %1444 = vmatpush.msra.mxu1 %v1394_v3  ;;  %v1159_v11 = vadd.f32 %v1095_v38, %v963_v15  ;;  %v931_v1 = vsel %vm865_vm0, %v2388_v50, 0.0  ;;  %v1127_v59 = vsel %vm1061_vm1, %v2392_v58, 0.0  ;;  %v1323_v56 = vsel %vm1257_vm2, %v2394_v49, 0.0 }
 0x104   : > { %v995_v35 = vadd.f32 %v931_v1, %v799_v34  ;;  %v772_v60 = vsel %vm706_vm8, %v2577_v46, 0.0  ;;  %v904_v37 = vsel %vm838_vm9, %v2579_v4, 0.0  ;;  %v1100_v40 = vsel %vm1034_vm10, %v2583_v5, 0.0 }
 0x105   : > { %v1355_v42 = vadd.f32 %v1291_v31, %v1159_v11  ;;  %v968_v51 = vadd.f32 %v904_v37, %v772_v60  ;;  %vm1230_vm3 = vcmp.eq.s32.totalorder %v2821_v2, %v2602_v7  ;;  %vm738_vm5 = vcmp.eq.s32.totalorder %v2824_v63, %v2575_v45 }
 0x106   : > { %v1191_v27 = vadd.f32 %v1127_v59, %v995_v35  ;;  %v1296_v39 = vsel %vm1230_vm3, %v2585_v29, 0.0  ;;  %v804_v53 = vsel %vm738_vm5, %v2577_v46, 0.0  ;;  %vm870_vm4 = vcmp.eq.s32.totalorder %v2824_v63, %v2581_v61 }
 0x107   : > { %1468 = vmatpush.msra.mxu2 %v1355_v42  ;;  %v1164_v20 = vadd.f32 %v1100_v40, %v968_v51  ;;  %v936_v26 = vsel %vm870_vm4, %v2579_v4, 0.0  ;;  %vm1066_vm6 = vcmp.eq.s32.totalorder %v2824_v63, %v2589_v33  ;;  %vm1262_vm7 = vcmp.eq.s32.totalorder %v2824_v63, %v2602_v7  ;;  %v1410_v42 = vld [vmem:[%s251_s19] sm:$0xff]  ;;  %s1722_s19 = sshll.u32 %s2012_s18, 3 }
 0x108   : > { %v1387_v2 = vadd.f32 %v1323_v56, %v1191_v27  ;;  %v1000_v55 = vadd.f32 %v936_v26, %v804_v53  ;;  %v1132_v13 = vsel %vm1066_vm6, %v2583_v5, 0.0  ;;  %v1328_v6 = vsel %vm1262_vm7, %v2585_v29, 0.0  ;;  %1412 = vst [vmem:[#allocation1] ss:$2 sm:$0xff] %v1410_v42  ;;  %s1526_s10 = scalar_lea.hbm %s3444_s3, %s1722_s19 }
 0x109   : > { %v1360_v25 = vadd.f32 %v1296_v39, %v1164_v20  ;;  %v3067_v8 = vadd.s32 24, %v2292_v62  ;;  %v3070_v22 = vadd.s32 152, %v2292_v62  ;;  %vm704_vm8 = vcmp.eq.s32.totalorder %v2881_v18, %v2575_v45  ;;  %s1530_s22 = sshll.u32 %s1526_s10, 4  ;;  %s1531_s22 = int_to_ptr.hbm [resolvable:$true] %s1530_s22 }
 0x10a   : > { %1488 = vmatpush.msra.mxu3 %v1387_v2  ;;  %v1196_v23 = vadd.f32 %v1132_v13, %v1000_v55  ;;  %v770_v63 = vsel %vm704_vm8, %v2577_v46, 0.0  ;;  %vm836_vm9 = vcmp.eq.s32.totalorder %v2881_v18, %v2581_v61  ;;  %vm1032_vm10 = vcmp.eq.s32.totalorder %v2881_v18, %v2589_v33  ;;  %s1944_s18 = sshra.s32 %s1531_s22, 4  ;;  %s1945_s18 = int_to_ptr.hbm [resolvable:$true] %s1944_s18 }
 0x10b   : > { %1425 = vmatpush.msra.mxu0 %v1360_v25  ;;  %vm699_vm11 = vcmp.eq.s32.totalorder %v3067_v8, %v2384_v47  ;;  %vm831_vm12 = vcmp.eq.s32.totalorder %v3067_v8, %v2390_v52  ;;  %vm1027_vm13 = vcmp.eq.s32.totalorder %v3067_v8, %v2398_v57  ;;  %vm1223_vm14 = vcmp.eq.s32.totalorder %v3067_v8, %v2411_v10  ;;  %s1946_s27 = scalar_lea.hbm %s1945_s18, 8  ;;  %p1951_p11 = scmp.lt.s32.totalorder %s1945_s18, %s3444_s3 }
 0x10c   : > { %v1392_v16 = vadd.f32 %v1328_v6, %v1196_v23  ;;  %v765_v38 = vsel %vm699_vm11, %v2386_v48, 0.0  ;;  %v897_v3 = vsel %vm831_vm12, %v2388_v50, 0.0  ;;  %v1093_v15 = vsel %vm1027_vm13, %v2392_v58, 0.0  ;;  %p1947_p2 = scmp.ne.s32.totalorder %s1945_s18, %s1946_s27  ;;  %p1952_p12 = scmp.lt.s32.totalorder %s1950_s0, %s1946_s27 }
 0x10d   : > { %v961_v31 = vadd.f32 %v897_v3, %v765_v38  ;;  %v1289_v34 = vsel %vm1223_vm14, %v2394_v49, 0.0  ;;  %vm731_vm15 = vcmp.eq.s32.totalorder %v3070_v22, %v2384_v47  ;;  %vm863_vm0 = vcmp.eq.s32.totalorder %v3070_v22, %v2390_v52 }
 0x10e   : > { %1445 = vmatpush.msra.mxu1 %v1392_v16  ;;  %v797_v11 = vsel %vm731_vm15, %v2386_v48, 0.0  ;;  %v929_v1 = vsel %vm863_vm0, %v2388_v50, 0.0  ;;  %vm1059_vm1 = vcmp.eq.s32.totalorder %v3070_v22, %v2398_v57  ;;  %vm1255_vm2 = vcmp.eq.s32.totalorder %v3070_v22, %v2411_v10  ;;  %p1948_p4 = pnand %p1947_p2, %p2128_p9  ;;  %p1953_p13 = por %p1952_p12, %p1951_p11 }
 0x10f   : > { %v1157_v59 = vadd.f32 %v1093_v15, %v961_v31  ;;  %v993_v56 = vadd.f32 %v929_v1, %v797_v11  ;;  %v1125_v35 = vsel %vm1059_vm1, %v2392_v58, 0.0  ;;  %v1321_v60 = vsel %vm1255_vm2, %v2394_v49, 0.0 }
 0x110   : > { %v902_v37 = vsel %vm836_vm9, %v2579_v4, 0.0  ;;  %v1098_v40 = vsel %vm1032_vm10, %v2583_v5, 0.0  ;;  %vm1228_vm3 = vcmp.eq.s32.totalorder %v2881_v18, %v2602_v7  ;;  %vm736_vm5 = vcmp.eq.s32.totalorder %v2884_v43, %v2575_v45  ;;  %p1949_p8 = pneg %p1948_p4 }
 0x111   : > { %v1353_v51 = vadd.f32 %v1289_v34, %v1157_v59  ;;  %v1189_v27 = vadd.f32 %v1125_v35, %v993_v56  ;;  %v966_v39 = vadd.f32 %v902_v37, %v770_v63  ;;  %v1294_v53 = vsel %vm1228_vm3, %v2585_v29, 0.0 }
 0x112   : > { %v802_v20 = vsel %vm736_vm5, %v2577_v46, 0.0  ;;  %vm868_vm4 = vcmp.eq.s32.totalorder %v2884_v43, %v2581_v61  ;;  %vm1064_vm6 = vcmp.eq.s32.totalorder %v2884_v43, %v2589_v33  ;;  %vm1260_vm7 = vcmp.eq.s32.totalorder %v2884_v43, %v2602_v7  ;;  %p1954_p0 = pnand %p1953_p13, %p1949_p8 }
 0x113   : > { %1469 = vmatpush.msra.mxu2 %v1353_v51  ;;  %v1385_v18 = vadd.f32 %v1321_v60, %v1189_v27  ;;  %v1162_v26 = vadd.f32 %v1098_v40, %v966_v39  ;;  %v934_v2 = vsel %vm868_vm4, %v2579_v4, 0.0  ;;  %v1130_v55 = vsel %vm1064_vm6, %v2583_v5, 0.0 }
 0x114   : > { %v998_v13 = vadd.f32 %v934_v2, %v802_v20  ;;  %v1326_v6 = vsel %vm1260_vm7, %v2585_v29, 0.0  ;;  %v3129_v25 = vadd.s32 16, %v2292_v62  ;;  %v3132_v23 = vadd.s32 144, %v2292_v62 }
 0x115   : > { %1489 = vmatpush.msra.mxu3 %v1385_v18  ;;  %v1358_v63 = vadd.f32 %v1294_v53, %v1162_v26  ;;  %vm702_vm8 = vcmp.eq.s32.totalorder %v2944_v54, %v2575_v45  ;;  %vm834_vm9 = vcmp.eq.s32.totalorder %v2944_v54, %v2581_v61  ;;  %vm1030_vm10 = vcmp.eq.s32.totalorder %v2944_v54, %v2589_v33 }
 0x116   : > { %v1194_v43 = vadd.f32 %v1130_v55, %v998_v13  ;;  %vm697_vm11 = vcmp.eq.s32.totalorder %v3129_v25, %v2384_v47  ;;  %vm829_vm12 = vcmp.eq.s32.totalorder %v3129_v25, %v2390_v52  ;;  %vm1025_vm13 = vcmp.eq.s32.totalorder %v3129_v25, %v2398_v57 }
 0x117   : > { %1426 = vmatpush.msra.mxu0 %v1358_v63  ;;  %v763_v16 = vsel %vm697_vm11, %v2386_v48, 0.0  ;;  %v895_v38 = vsel %vm829_vm12, %v2388_v50, 0.0  ;;  %v1091_v3 = vsel %vm1025_vm13, %v2392_v58, 0.0  ;;  %vm1221_vm14 = vcmp.eq.s32.totalorder %v3129_v25, %v2411_v10 }
 0x118   : > { %v1390_v15 = vadd.f32 %v1326_v6, %v1194_v43  ;;  %v959_v31 = vadd.f32 %v895_v38, %v763_v16  ;;  %v1287_v34 = vsel %vm1221_vm14, %v2394_v49, 0.0  ;;  %vm729_vm15 = vcmp.eq.s32.totalorder %v3132_v23, %v2384_v47 }
 0x119   : > { %v795_v11 = vsel %vm729_vm15, %v2386_v48, 0.0  ;;  %vm861_vm0 = vcmp.eq.s32.totalorder %v3132_v23, %v2390_v52  ;;  %vm1057_vm1 = vcmp.eq.s32.totalorder %v3132_v23, %v2398_v57  ;;  %vm1253_vm2 = vcmp.eq.s32.totalorder %v3132_v23, %v2411_v10 }
 0x11a   : > { %1446 = vmatpush.msra.mxu1 %v1390_v15  ;;  %v1155_v1 = vadd.f32 %v1091_v3, %v959_v31  ;;  %v927_v59 = vsel %vm861_vm0, %v2388_v50, 0.0  ;;  %v1123_v56 = vsel %vm1057_vm1, %v2392_v58, 0.0  ;;  %v1319_v35 = vsel %vm1253_vm2, %v2394_v49, 0.0 }
 0x11b   : > { %v991_v60 = vadd.f32 %v927_v59, %v795_v11  ;;  %v768_v37 = vsel %vm702_vm8, %v2577_v46, 0.0  ;;  %v900_v40 = vsel %vm834_vm9, %v2579_v4, 0.0  ;;  %v1096_v42 = vsel %vm1030_vm10, %v2583_v5, 0.0 }
 0x11c   : > { %v1351_v51 = vadd.f32 %v1287_v34, %v1155_v1  ;;  %v964_v27 = vadd.f32 %v900_v40, %v768_v37  ;;  %vm1226_vm3 = vcmp.eq.s32.totalorder %v2944_v54, %v2602_v7  ;;  %vm734_vm5 = vcmp.eq.s32.totalorder %v2947_v41, %v2575_v45 }
 0x11d   : > { %v1187_v39 = vadd.f32 %v1123_v56, %v991_v60  ;;  %v1292_v53 = vsel %vm1226_vm3, %v2585_v29, 0.0  ;;  %v800_v20 = vsel %vm734_vm5, %v2577_v46, 0.0  ;;  %vm866_vm4 = vcmp.eq.s32.totalorder %v2947_v41, %v2581_v61 }
 0x11e   : > { %1470 = vmatpush.msra.mxu2 %v1351_v51  ;;  %v1160_v18 = vadd.f32 %v1096_v42, %v964_v27  ;;  %v932_v26 = vsel %vm866_vm4, %v2579_v4, 0.0  ;;  %vm1062_vm6 = vcmp.eq.s32.totalorder %v2947_v41, %v2589_v33  ;;  %vm1258_vm7 = vcmp.eq.s32.totalorder %v2947_v41, %v2602_v7 }
 0x11f   : > { %v1383_v54 = vadd.f32 %v1319_v35, %v1187_v39  ;;  %v996_v2 = vadd.f32 %v932_v26, %v800_v20  ;;  %v1128_v55 = vsel %vm1062_vm6, %v2583_v5, 0.0  ;;  %v1324_v13 = vsel %vm1258_vm7, %v2585_v29, 0.0 }
 0x120   : > { %v1356_v6 = vadd.f32 %v1292_v53, %v1160_v18  ;;  %v3192_v63 = vadd.s32 8, %v2292_v62  ;;  %v3195_v43 = vadd.s32 136, %v2292_v62  ;;  %vm700_vm8 = vcmp.eq.s32.totalorder %v3004_v14, %v2575_v45 }
 0x121   : > { %1490 = vmatpush.msra.mxu3 %v1383_v54  ;;  %v1192_v16 = vadd.f32 %v1128_v55, %v996_v2  ;;  %v766_v41 = vsel %vm700_vm8, %v2577_v46, 0.0  ;;  %vm832_vm9 = vcmp.eq.s32.totalorder %v3004_v14, %v2581_v61  ;;  %vm1028_vm10 = vcmp.eq.s32.totalorder %v3004_v14, %v2589_v33 }
 0x122   : > { %1427 = vmatpush.msra.mxu0 %v1356_v6  ;;  %vm695_vm11 = vcmp.eq.s32.totalorder %v3192_v63, %v2384_v47  ;;  %vm827_vm12 = vcmp.eq.s32.totalorder %v3192_v63, %v2390_v52  ;;  %vm1023_vm13 = vcmp.eq.s32.totalorder %v3192_v63, %v2398_v57  ;;  %vm1219_vm14 = vcmp.eq.s32.totalorder %v3192_v63, %v2411_v10 }
 0x123   : > { %v1388_v38 = vadd.f32 %v1324_v13, %v1192_v16  ;;  %v761_v3 = vsel %vm695_vm11, %v2386_v48, 0.0  ;;  %v893_v15 = vsel %vm827_vm12, %v2388_v50, 0.0  ;;  %v1089_v31 = vsel %vm1023_vm13, %v2392_v58, 0.0 }
 0x124   : > { %v957_v34 = vadd.f32 %v893_v15, %v761_v3  ;;  %v1285_v11 = vsel %vm1219_vm14, %v2394_v49, 0.0  ;;  %vm727_vm15 = vcmp.eq.s32.totalorder %v3195_v43, %v2384_v47  ;;  %vm859_vm0 = vcmp.eq.s32.totalorder %v3195_v43, %v2390_v52 }
 0x125   : > { %1447 = vmatpush.msra.mxu1 %v1388_v38  ;;  %v793_v1 = vsel %vm727_vm15, %v2386_v48, 0.0  ;;  %v925_v59 = vsel %vm859_vm0, %v2388_v50, 0.0  ;;  %vm1055_vm1 = vcmp.eq.s32.totalorder %v3195_v43, %v2398_v57  ;;  %vm1251_vm2 = vcmp.eq.s32.totalorder %v3195_v43, %v2411_v10 }
 0x126   : > { %v1153_v56 = vadd.f32 %v1089_v31, %v957_v34  ;;  %v989_v35 = vadd.f32 %v925_v59, %v793_v1  ;;  %v1121_v60 = vsel %vm1055_vm1, %v2392_v58, 0.0  ;;  %v1317_v37 = vsel %vm1251_vm2, %v2394_v49, 0.0 }
 0x127   : > { %v898_v40 = vsel %vm832_vm9, %v2579_v4, 0.0  ;;  %v1094_v42 = vsel %vm1028_vm10, %v2583_v5, 0.0  ;;  %vm1224_vm3 = vcmp.eq.s32.totalorder %v3004_v14, %v2602_v7  ;;  %vm732_vm5 = vcmp.eq.s32.totalorder %v3007_v17, %v2575_v45 }
 0x128   : > { %v1349_v51 = vadd.f32 %v1285_v11, %v1153_v56  ;;  %v1185_v27 = vadd.f32 %v1121_v60, %v989_v35  ;;  %v962_v39 = vadd.f32 %v898_v40, %v766_v41  ;;  %v1290_v53 = vsel %vm1224_vm3, %v2585_v29, 0.0 }
 0x129   : > { %v798_v20 = vsel %vm732_vm5, %v2577_v46, 0.0  ;;  %vm864_vm4 = vcmp.eq.s32.totalorder %v3007_v17, %v2581_v61  ;;  %vm1060_vm6 = vcmp.eq.s32.totalorder %v3007_v17, %v2589_v33  ;;  %vm1256_vm7 = vcmp.eq.s32.totalorder %v3007_v17, %v2602_v7 }
 0x12a   : > { %1471 = vmatpush.msra.mxu2 %v1349_v51  ;;  %v1381_v14 = vadd.f32 %v1317_v37, %v1185_v27  ;;  %v1158_v18 = vadd.f32 %v1094_v42, %v962_v39  ;;  %v930_v26 = vsel %vm864_vm4, %v2579_v4, 0.0  ;;  %v1126_v54 = vsel %vm1060_vm6, %v2583_v5, 0.0  ;;  %v3283_v37 = vld.sshfl [vmem:[#allocation1] sm:$0xff pattern:$0x75316420] }
 0x12b   : > { %v994_v2 = vadd.f32 %v930_v26, %v798_v20  ;;  %v1322_v55 = vsel %vm1256_vm7, %v2585_v29, 0.0  ;;  %vm693_vm8 = vcmp.eq.s32.totalorder %v2292_v62, %v2384_v47  ;;  %vm825_vm9 = vcmp.eq.s32.totalorder %v2292_v62, %v2390_v52  ;;  %v3305_v42 = vld.sshfl [vmem:[#allocation1 + $0x8] sm:$0xff pattern:$0x75316420] }
 0x12c   : > { %1491 = vmatpush.msra.mxu3 %v1381_v14  ;;  %v1354_v13 = vadd.f32 %v1290_v53, %v1158_v18  ;;  %v759_v17 = vsel %vm693_vm8, %v2386_v48, 0.0  ;;  %v891_v6 = vsel %vm825_vm9, %v2388_v50, 0.0  ;;  %vm1021_vm10 = vcmp.eq.s32.totalorder %v2292_v62, %v2398_v57 }
 0x12d   : > { %v1190_v16 = vadd.f32 %v1126_v54, %v994_v2  ;;  %v955_v41 = vadd.f32 %v891_v6, %v759_v17  ;;  %v1087_v38 = vsel %vm1021_vm10, %v2392_v58, 0.0  ;;  %vm1217_vm11 = vcmp.eq.s32.totalorder %v2292_v62, %v2411_v10 }
 0x12e   : > { %1428 = vmatpush.msra.mxu0 %v1354_v13  ;;  %v1283_v3 = vsel %vm1217_vm11, %v2394_v49, 0.0  ;;  %v3264_v15 = vadd.s32 128, %v2292_v62  ;;  %vm698_vm12 = vcmp.eq.s32.totalorder %v3067_v8, %v2575_v45  ;;  %vm830_vm13 = vcmp.eq.s32.totalorder %v3067_v8, %v2581_v61 }
 0x12f   : > { %v1386_v31 = vadd.f32 %v1322_v55, %v1190_v16  ;;  %v1151_v34 = vadd.f32 %v1087_v38, %v955_v41  ;;  %v764_v11 = vsel %vm698_vm12, %v2577_v46, 0.0  ;;  %v896_v1 = vsel %vm830_vm13, %v2579_v4, 0.0 }
 0x130   : > { %vm725_vm14 = vcmp.eq.s32.totalorder %v3264_v15, %v2384_v47  ;;  %vm857_vm15 = vcmp.eq.s32.totalorder %v3264_v15, %v2390_v52  ;;  %vm1053_vm0 = vcmp.eq.s32.totalorder %v3264_v15, %v2398_v57  ;;  %vm1249_vm1 = vcmp.eq.s32.totalorder %v3264_v15, %v2411_v10 }
 0x131   : > { %1448 = vmatpush.msra.mxu1 %v1386_v31  ;;  %v1347_v59 = vadd.f32 %v1283_v3, %v1151_v34  ;;  %v791_v56 = vsel %vm725_vm14, %v2386_v48, 0.0  ;;  %v923_v35 = vsel %vm857_vm15, %v2388_v50, 0.0  ;;  %v1119_v60 = vsel %vm1053_vm0, %v2392_v58, 0.0 }
 0x132   : > { %v987_v47 = vadd.f32 %v923_v35, %v791_v56  ;;  %v1315_v40 = vsel %vm1249_vm1, %v2394_v49, 0.0  ;;  %v960_v52 = vadd.f32 %v896_v1, %v764_v11  ;;  %vm1026_vm2 = vcmp.eq.s32.totalorder %v3067_v8, %v2589_v33 }
 0x133   : > { %1472 = vmatpush.msra.mxu2 %v1347_v59  ;;  %v1092_v57 = vsel %vm1026_vm2, %v2583_v5, 0.0  ;;  %vm1222_vm3 = vcmp.eq.s32.totalorder %v3067_v8, %v2602_v7  ;;  %vm730_vm5 = vcmp.eq.s32.totalorder %v3070_v22, %v2575_v45  ;;  %vm862_vm4 = vcmp.eq.s32.totalorder %v3070_v22, %v2581_v61 }
 0x134   : > { %v1183_v48 = vadd.f32 %v1119_v60, %v987_v47  ;;  %1473 = vmatmul.f32.vlgmr.msra.gmra.mxu2 %v3283_v37  ;;  %v1156_v50 = vadd.f32 %v1092_v57, %v960_v52  ;;  %v1288_v58 = vsel %vm1222_vm3, %v2585_v29, 0.0  ;;  %v796_v49 = vsel %vm730_vm5, %v2577_v46, 0.0 }
 0x135   : > { %v928_v10 = vsel %vm862_vm4, %v2579_v4, 0.0  ;;  %vm1058_vm6 = vcmp.eq.s32.totalorder %v3070_v22, %v2589_v33  ;;  %vm1254_vm7 = vcmp.eq.s32.totalorder %v3070_v22, %v2602_v7  ;;  %vm696_vm8 = vcmp.eq.s32.totalorder %v3129_v25, %v2575_v45 }
 0x136   : > { %v1379_v8 = vadd.f32 %v1315_v40, %v1183_v48  ;;  %v1352_v51 = vadd.f32 %v1288_v58, %v1156_v50  ;;  %v992_v27 = vadd.f32 %v928_v10, %v796_v49  ;;  %v1124_v39 = vsel %vm1058_vm6, %v2583_v5, 0.0 }
 0x137   : > { %v1320_v53 = vsel %vm1254_vm7, %v2585_v29, 0.0  ;;  %v762_v20 = vsel %vm696_vm8, %v2577_v46, 0.0  ;;  %vm828_vm9 = vcmp.eq.s32.totalorder %v3129_v25, %v2581_v61  ;;  %vm1024_vm10 = vcmp.eq.s32.totalorder %v3129_v25, %v2589_v33 }
 0x138   : > { %1492 = vmatpush.msra.mxu3 %v1379_v8  ;;  %1429 = vmatpush.msra.mxu0 %v1352_v51  ;;  %v1188_v22 = vadd.f32 %v1124_v39, %v992_v27  ;;  %v894_v14 = vsel %vm828_vm9, %v2579_v4, 0.0  ;;  %v1090_v18 = vsel %vm1024_vm10, %v2583_v5, 0.0  ;;  %vm1220_vm11 = vcmp.eq.s32.totalorder %v3129_v25, %v2602_v7 }
 0x139   : > { %1493 = vmatmul.f32.vlgmr.msra.gmra.mxu3 %v3305_v42  ;;  %v958_v26 = vadd.f32 %v894_v14, %v762_v20  ;;  %v1286_v54 = vsel %vm1220_vm11, %v2585_v29, 0.0  ;;  %vm728_vm12 = vcmp.eq.s32.totalorder %v3132_v23, %v2575_v45  ;;  %vm860_vm13 = vcmp.eq.s32.totalorder %v3132_v23, %v2581_v61 }
 0x13a   : > { %v1384_v2 = vadd.f32 %v1320_v53, %v1188_v22  ;;  %v794_v55 = vsel %vm728_vm12, %v2577_v46, 0.0  ;;  %v926_v13 = vsel %vm860_vm13, %v2579_v4, 0.0  ;;  %vm1056_vm14 = vcmp.eq.s32.totalorder %v3132_v23, %v2589_v33 }
 0x13b   : > { %v1154_v25 = vadd.f32 %v1090_v18, %v958_v26  ;;  %v990_v17 = vadd.f32 %v926_v13, %v794_v55  ;;  %v1122_v6 = vsel %vm1056_vm14, %v2583_v5, 0.0  ;;  %vm1252_vm15 = vcmp.eq.s32.totalorder %v3132_v23, %v2602_v7 }
 0x13c   : > { %1449 = vmatpush.msra.mxu1 %v1384_v2  ;;  %v1318_v16 = vsel %vm1252_vm15, %v2585_v29, 0.0  ;;  %vm694_vm0 = vcmp.eq.s32.totalorder %v3192_v63, %v2575_v45  ;;  %vm826_vm1 = vcmp.eq.s32.totalorder %v3192_v63, %v2581_v61  ;;  %vm1022_vm2 = vcmp.eq.s32.totalorder %v3192_v63, %v2589_v33 }
 0x13d   : > { %v1350_v41 = vadd.f32 %v1286_v54, %v1154_v25  ;;  %v1186_v38 = vadd.f32 %v1122_v6, %v990_v17  ;;  %v760_v3 = vsel %vm694_vm0, %v2577_v46, 0.0  ;;  %v892_v31 = vsel %vm826_vm1, %v2579_v4, 0.0 }
 0x13e   : > { %v956_v34 = vadd.f32 %v892_v31, %v760_v3  ;;  %v1088_v23 = vsel %vm1022_vm2, %v2583_v5, 0.0  ;;  %vm1218_vm3 = vcmp.eq.s32.totalorder %v3192_v63, %v2602_v7  ;;  %vm726_vm5 = vcmp.eq.s32.totalorder %v3195_v43, %v2575_v45 }
 0x13f   : > { %1430 = vmatpush.msra.mxu0 %v1350_v41  ;;  %v1382_v11 = vadd.f32 %v1318_v16, %v1186_v38  ;;  %v1284_v1 = vsel %vm1218_vm3, %v2585_v29, 0.0  ;;  %v792_v59 = vsel %vm726_vm5, %v2577_v46, 0.0  ;;  %vm858_vm4 = vcmp.eq.s32.totalorder %v3195_v43, %v2581_v61 }
 0x140   : > { %v1152_v56 = vadd.f32 %v1088_v23, %v956_v34  ;;  %v924_v35 = vsel %vm858_vm4, %v2579_v4, 0.0  ;;  %vm1054_vm6 = vcmp.eq.s32.totalorder %v3195_v43, %v2589_v33  ;;  %vm1250_vm7 = vcmp.eq.s32.totalorder %v3195_v43, %v2602_v7 }
 0x141   : > { %1450 = vmatpush.msra.mxu1 %v1382_v11  ;;  %v988_v63 = vadd.f32 %v924_v35, %v792_v59  ;;  %v1120_v60 = vsel %vm1054_vm6, %v2583_v5, 0.0  ;;  %v1316_v47 = vsel %vm1250_vm7, %v2585_v29, 0.0  ;;  %vm692_vm8 = vcmp.eq.s32.totalorder %v2292_v62, %v2575_v45 }
 0x142   : > { %v1348_v40 = vadd.f32 %v1284_v1, %v1152_v56  ;;  %v758_v52 = vsel %vm692_vm8, %v2577_v46, 0.0  ;;  %vm824_vm9 = vcmp.eq.s32.totalorder %v2292_v62, %v2581_v61  ;;  %vm1020_vm10 = vcmp.eq.s32.totalorder %v2292_v62, %v2589_v33 }
 0x143   : > { %v1184_v57 = vadd.f32 %v1120_v60, %v988_v63  ;;  %v890_v43 = vsel %vm824_vm9, %v2579_v4, 0.0  ;;  %v1086_v48 = vsel %vm1020_vm10, %v2583_v5, 0.0  ;;  %vm1216_vm11 = vcmp.eq.s32.totalorder %v2292_v62, %v2602_v7 }
 0x144   : > { %1431 = vmatpush.msra.mxu0 %v1348_v40  ;;  %v954_v50 = vadd.f32 %v890_v43, %v758_v52  ;;  %v1282_v58 = vsel %vm1216_vm11, %v2585_v29, 0.0  ;;  %vm724_vm12 = vcmp.eq.s32.totalorder %v3264_v15, %v2575_v45  ;;  %vm856_vm13 = vcmp.eq.s32.totalorder %v3264_v15, %v2581_v61 }
 0x145   : > { %v1380_v49 = vadd.f32 %v1316_v47, %v1184_v57  ;;  %v790_v10 = vsel %vm724_vm12, %v2577_v46, 0.0  ;;  %v922_v8 = vsel %vm856_vm13, %v2579_v4, 0.0  ;;  %vm1052_vm14 = vcmp.eq.s32.totalorder %v3264_v15, %v2589_v33 }
 0x146   : > { %v1150_v62 = vadd.f32 %v1086_v48, %v954_v50  ;;  %v986_v51 = vadd.f32 %v922_v8, %v790_v10  ;;  %v1118_v27 = vsel %vm1052_vm14, %v2583_v5, 0.0  ;;  %vm1248_vm15 = vcmp.eq.s32.totalorder %v3264_v15, %v2602_v7 }
 0x147   : > { %1451 = vmatpush.msra.mxu1 %v1380_v49  ;;  %v1314_v45 = vsel %vm1248_vm15, %v2585_v29, 0.0  ;;  %v441_v4 = vrot.slane %v2265_v36, 7  ;;  %v442_v5 = vrot.slane %v2247_v21, 7  ;;  %vm462_vm0 = vcmask 1040384  }
 0x148   : > { %v1346_v61 = vadd.f32 %v1282_v58, %v1150_v62  ;;  %v1182_v39 = vadd.f32 %v1118_v27, %v986_v51  ;;  %v447_v33 = vrot.slane %v2273_v44, 5  ;;  %v448_v29 = vrot.slane %v2254_v28, 5 }
 0x149   : > { %v463_v7 = vsel %vm462_vm0, %v2261_v32, %v441_v4  ;;  %v464_v15 = vsel %vm462_vm0, %v2243_v19, %v442_v5  ;;  %v458_v53 = vperm.slane %v2237_v9, 0  ;;  %v459_v36 = vperm.slane %v2237_v9, 4 }
 0x14a   : > { %1432 = vmatpush.msra.mxu0 %v1346_v61  ;;  %v1378_v46 = vadd.f32 %v1314_v45, %v1182_v39  ;;  %vm465_vm1 = vcmask 1041408   ;;  %vm468_vm2 = vcmask 1042432   ;;  %vm471_vm3 = vcmask 1043456  }
 0x14b   : > { %1433 = vmatmul.f32.vlgmr.msra.gmra.mxu0 %v3283_v37  ;;  %v453_v37 = vrot.slane %v2278_v0, 4  ;;  %v466_v21 = vsel %vm465_vm1, %v463_v7, %v2250_v24  ;;  %v467_v28 = vsel %vm465_vm1, %v464_v15, %v2239_v12  ;;  %vm474_vm5 = vcmask 1044480  }
 0x14c   : > { %1452 = vmatpush.msra.mxu1 %v1378_v46  ;;  %v469_v19 = vsel %vm468_vm2, %v466_v21, %v447_v33 }
 0x14d   : > { %1453 = vmatmul.f32.vlgmr.msra.gmra.mxu1 %v3305_v42  ;;  %v454_v42 = vrot.slane %v2258_v30, 4  ;;  %v470_v30 = vsel %vm468_vm2, %v467_v28, %v448_v29  ;;  %v472_v32 = vsel %vm471_vm3, %v469_v19, %v453_v37 }
 0x14e   : > { %v475_v44 = vsel %vm474_vm5, %v472_v32, %v458_v53 }
 0x14f   : > { %v473_v9 = vsel %vm471_vm3, %v470_v30, %v454_v42  ;;  %477 = vst [vmem:[%s312_s5] sm:$0x3f] %v475_v44 }
 0x150   : > { %v476_v0 = vsel %vm474_vm5, %v473_v9, %v459_v36 }
 0x151   : > { %478 = vst [vmem:[%s312_s5 + $0x8] sm:$0x3f] %v476_v0 }
 0x1b7   : > { %v1474_v20 = vpop.f32.mrf.mxu2 }
 0x1bc   : > { %v1494_v24 = vpop.f32.mrf.mxu3 }
 0x1bd   : > { %v1495_v12 = vadd.f32 %v1494_v24, %v1474_v20 }
 0x1bf   : > { %v1499_v14 = vrot.slane %v1495_v12, 4 }
 0x1c8   : > { %v1434_v22 = vpop.f32.mrf.mxu0 }
 0x1ca   : > { %v1454_v18 = vpop.f32.mrf.mxu1 }
 0x1cb   : > { %v1455_v26 = vadd.f32 %v1454_v18, %v1434_v22 }
 0x1cd   : > { %v1500_v54 = vsel %vm471_vm3, %v1455_v26, %v1499_v14 }
 0x1ce   : > { %1502 = vst [vmem:[%s290_s12] sm:$0xff] %v1500_v54 }
 0x1cf   : > { %1957 = shalt.err (!%p1954_p0)
}
 0x1d0   : > { %1771 = dma.vmem_to_hbm [thread:$0]  (%p2128_p9), %s1529_s21, 128, %s1531_s22, %s1504_s25  }
 0x1d1 PF: > { %s1546_s13 = sand.u32 1, %s2000_s15   ;;  %p3486_p3 = scmp.ge.s32.totalorder %s2020_s20, 2 }
 0x1d2   : > { %s1547_s8 = scalar_lea.sflag [#allocation4], %s1546_s13 }
 0x1d3   : > { %p1785_p5 = pnand %p3486_p3, %p2099_p6 }
 0x1d5   : > { %p1786_p7 = pneg %p1785_p5 }
 0x1d7   : > { %1995 = dma.done.wait (%p1786_p7), %s1547_s8, 128  }
 0x1d8   : > { %1997 = vsyncadd (%p1786_p7), %s1547_s8, 4294967168  ;;  %s25_s20 = sadd.s32 1, %s2020_s20   ;;  %s3487_s18 = sld [smem:[#allocation14_spill]] }
 0x1d9   : > { %p22_p10 = scmp.ge.s32.totalorder %s25_s20, 4   ;;  %s3488_s19 = sld [smem:[#allocation15_spill]] }
 0x1da   : > { %s3489_s15 = smov %s2004_s16  ;;  %s3490_s16 = smov %s2008_s17 }
 0x1db   : > { %s3491_s17 = smov %s2134_s11  ;;  %24 = sbr.rel (!%p22_p10) target bundleno = 11 (0xb), region = 107 }
 0x1e0   :  { %1565 = vsyncpa [#allocation3], 1 }
 0x1e1   :  { %1567 = vsyncpa [#allocation3 + $0x1], 1 }
 0x1e2   :  { %1568 = vsyncpa [#allocation8], 1 }
 0x1e3   :  { %1570 = vsyncpa [#allocation8 + $0x1], 1 }
 0x1e4   :  { %1571 = vsyncpa [#allocation4], 1 }
 0x1e5   :  { %1573 = vsyncpa [#allocation4 + $0x1], 1 }
 0x1e6   :  { %1574 = vsyncpa [#allocation5], 1 }
 0x1e7   :  { %1576 = vsyncpa [#allocation5 + $0x1], 1 }

</bundles_post_ra>
